<compile_context>
chip_gen: v6e
topology: v6e:2x2x1
jax: 0.10.0
libtpu: 0.0.40
codegen_flags: <defaults>
</compile_context>

<pallas_src>
import functools

import jax
import jax.numpy as jnp
from jax.experimental import pallas as pl
from jax.experimental.pallas import tpu as pltpu

EPS = 1e-5            # matches aggregate_std epsilon in the reference PNA code
LEAKY_SLOPE = 0.01    # torch.nn.LeakyReLU default negative_slope
LANE = 128


def _round_up(v, m):
    return ((v + m - 1) // m) * m


def _bf16_grid(a):
    # Keep demo values on the bf16 grid so the MXU's default f32 matmul path
    # (bf16 operands, f32 accumulation) is exact and the numeric check is tight.
    return a.astype(jnp.bfloat16).astype(jnp.float32)


# ----------------------------- Pallas kernel --------------------------------


def pna_fused_kernel(x_ref, adj_ref, wi_ref, wj_ref, bpre_ref,
                     wx_ref, wid_ref, wamp_ref, watt_ref, bpost_ref,
                     wmix_ref, bmix_ref, o_ref, *, avg_d_log, j_tile):
    """Fused PNA layer (all towers + aggregators + scalers + posttrans + mixing).

    One grid program = one graph. Feature axes are lane-padded; tower weights are
    packed block-diagonally so all towers are processed in one pass.
    """
    x = x_ref[0]        # (N, Dp)   towers packed contiguously along lanes, zero padded
    adj = adj_ref[0]    # (N, N)
    n = adj.shape[0]
    dp = x.shape[-1]

    # ---- pretrans (single Linear, no activation):  h[i, j] = s[i] + c[j] ----
    a = jnp.dot(x, wi_ref[...], preferred_element_type=jnp.float32)    # (N, Dp)
    c = jnp.dot(x, wj_ref[...], preferred_element_type=jnp.float32)    # (N, Dp)
    s = a + bpre_ref[...]                                              # (N, Dp)

    deg = jnp.sum(adj, axis=-1, keepdims=True)                         # (N, 1)
    has_nbr = deg > 0.0
    # deg is integer valued, so max(deg, 1) == deg whenever a node has neighbors;
    # the clamp only guards isolated nodes (reference would produce inf/nan there).
    inv_deg = pl.reciprocal(jnp.maximum(deg, 1.0), approx=True)        # EUP slot

    # ---- mean / std on the MXU (no (N, N, Dp) intermediate) -----------------
    ac = jnp.dot(adj, c, preferred_element_type=jnp.float32)           # sum_j adj*c_j
    ac2 = jnp.dot(adj, c * c, preferred_element_type=jnp.float32)      # sum_j adj*c_j^2
    mean = s + ac * inv_deg
    e2 = s * s + (2.0 * s * ac + ac2) * inv_deg                        # E[h^2]
    var = jnp.maximum(e2 - mean * mean, 0.0)
    std = jnp.sqrt(var + EPS)

    # ---- max / min: separable, j-tiled masked running max/min of c ----------
    cmax = jnp.full((n, dp), -jnp.inf, dtype=jnp.float32)
    cmin = jnp.full((n, dp), jnp.inf, dtype=jnp.float32)
    for j0 in range(0, n, j_tile):
        tj = min(j_tile, n - j0)
        nbr = adj[:, j0:j0 + tj][:, :, None] > 0.0                     # (N, tj, 1)
        c_t = c[j0:j0 + tj, :][None, :, :]                             # (1, tj, Dp)
        cmax = jnp.maximum(cmax, jnp.max(jnp.where(nbr, c_t, -jnp.inf), axis=1))
        cmin = jnp.minimum(cmin, jnp.min(jnp.where(nbr, c_t, jnp.inf), axis=1))
    cmax = jnp.where(has_nbr, cmax, 0.0)   # guard isolated nodes (keep outputs finite)
    cmin = jnp.where(has_nbr, cmin, 0.0)
    mx = s + cmax
    mn = s + cmin

    # ---- scalers folded into split posttrans weights ------------------------
    log_d = jnp.log(deg + 1.0)                                         # (N, 1)
    amp_scale = log_d * (1.0 / avg_d_log)
    log_d_safe = jnp.where(has_nbr, log_d, 1.0)                        # guard deg == 0
    att_scale = avg_d_log * pl.reciprocal(log_d_safe, approx=True)

    m4 = jnp.concatenate([mean, mx, mn, std], axis=-1)                 # (N, 4*Dp)
    p_x = jnp.dot(x, wx_ref[...], preferred_element_type=jnp.float32)
    p_id = jnp.dot(m4, wid_ref[...], preferred_element_type=jnp.float32)
    p_amp = jnp.dot(m4, wamp_ref[...], preferred_element_type=jnp.float32)
    p_att = jnp.dot(m4, watt_ref[...], preferred_element_type=jnp.float32)
    y = p_x + p_id + amp_scale * p_amp + att_scale * p_att + bpost_ref[...]

    # ---- mixing FCLayer: Linear + LeakyReLU(0.01) ----------------------------
    z = jnp.dot(y, wmix_ref[...], preferred_element_type=jnp.float32) + bmix_ref[...]
    o_ref[0] = jnp.where(z > 0.0, z, LEAKY_SLOPE * z).astype(o_ref.dtype)


# ------------------------------- wrappers -----------------------------------


def init_pna_layer(key, in_features, out_features, towers,
                   n_aggregators=4, n_scalers=3, divide_input=True):
    """Deterministic synthetic parameters (shapes follow PNALayer.__init__)."""
    input_tower = in_features // towers if divide_input else in_features
    output_tower = out_features // towers
    params = {"towers": []}
    for _ in range(towers):
        key, k1, k2, k3, k4 = jax.random.split(key, 5)
        wpre = _bf16_grid(0.1 * jax.random.normal(k1, (2 * input_tower, input_tower), jnp.float32))
        bpre = _bf16_grid(0.1 * jax.random.normal(k2, (1, input_tower), jnp.float32))
        post_in = (n_aggregators * n_scalers + 1) * input_tower
        wpost = _bf16_grid(0.1 * jax.random.normal(k3, (post_in, output_tower), jnp.float32))
        bpost = _bf16_grid(0.1 * jax.random.normal(k4, (1, output_tower), jnp.float32))
        params["towers"].append((wpre, bpre, wpost, bpost))
    key, k5, k6 = jax.random.split(key, 3)
    params["wmix"] = _bf16_grid(0.1 * jax.random.normal(k5, (out_features, out_features), jnp.float32))
    params["bmix"] = _bf16_grid(0.1 * jax.random.normal(k6, (1, out_features), jnp.float32))
    return params


def build_fused_params(params, *, towers, in_features, out_features,
                       divide_input=True, lane=LANE):
    """Pack per-tower weights into block-diagonal, scaler-split, lane-padded tensors."""
    din_t = in_features // towers if divide_input else in_features
    dout_t = out_features // towers
    d = towers * din_t
    dout = towers * dout_t
    dp = _round_up(d, lane)
    doutp = _round_up(dout, lane)

    wi = jnp.zeros((dp, dp), jnp.float32)
    wj = jnp.zeros((dp, dp), jnp.float32)
    bpre = jnp.zeros((1, dp), jnp.float32)
    wx = jnp.zeros((dp, doutp), jnp.float32)
    wid = jnp.zeros((4 * dp, doutp), jnp.float32)
    wamp = jnp.zeros((4 * dp, doutp), jnp.float32)
    watt = jnp.zeros((4 * dp, doutp), jnp.float32)
    bpost = jnp.zeros((1, doutp), jnp.float32)

    for t, (wpre_t, bpre_t, wpost_t, bpost_t) in enumerate(params["towers"]):
        r0, c0 = t * din_t, t * dout_t
        wi = wi.at[r0:r0 + din_t, r0:r0 + din_t].set(wpre_t[:din_t])
        wj = wj.at[r0:r0 + din_t, r0:r0 + din_t].set(wpre_t[din_t:])
        bpre = bpre.at[0, r0:r0 + din_t].set(bpre_t[0])
        wx = wx.at[r0:r0 + din_t, c0:c0 + dout_t].set(wpost_t[:din_t])
        bpost = bpost.at[0, c0:c0 + dout_t].set(bpost_t[0])
        # posttrans rows: [x | id(mean,max,min,std) | amp(...) | att(...)]
        for agg in range(4):
            src_id = wpost_t[(1 + agg) * din_t:(2 + agg) * din_t]
            src_amp = wpost_t[(5 + agg) * din_t:(6 + agg) * din_t]
            src_att = wpost_t[(9 + agg) * din_t:(10 + agg) * din_t]
            rdst = slice(agg * dp + r0, agg * dp + r0 + din_t)
            wid = wid.at[rdst, c0:c0 + dout_t].set(src_id)
            wamp = wamp.at[rdst, c0:c0 + dout_t].set(src_amp)
            watt = watt.at[rdst, c0:c0 + dout_t].set(src_att)

    wmix = jnp.zeros((doutp, doutp), jnp.float32).at[:dout, :dout].set(params["wmix"])
    bmix = jnp.zeros((1, doutp), jnp.float32).at[0, :dout].set(params["bmix"][0])
    return {"wi": wi, "wj": wj, "bpre": bpre, "wx": wx, "wid": wid, "wamp": wamp,
            "watt": watt, "bpost": bpost, "wmix": wmix, "bmix": bmix,
            "d": d, "dp": dp, "dout": dout, "doutp": doutp,
            "towers": towers, "divide_input": divide_input}


def pna_layer_forward(x, adj, fused, *, avg_d_log, j_tile=128):
    """Single pallas_call for the whole PNALayer forward pass."""
    B, N, _ = x.shape
    d, dp = fused["d"], fused["dp"]
    dout, doutp = fused["dout"], fused["doutp"]

    if fused["divide_input"]:
        x_packed = x                                       # towers already contiguous
    else:
        x_packed = jnp.concatenate([x] * fused["towers"], axis=-1)
    assert x_packed.shape[-1] == d
    if dp > d:
        x_packed = jnp.pad(x_packed, ((0, 0), (0, 0), (0, dp - d)))

    kern = functools.partial(pna_fused_kernel, avg_d_log=float(avg_d_log),
                             j_tile=int(j_tile))
    out_p = pl.pallas_call(
        kern,
        out_shape=jax.ShapeDtypeStruct((B, N, doutp), x.dtype),
        grid=(B,),
        in_specs=[
            pl.BlockSpec((1, N, dp), lambda b: (b, 0, 0)),
            pl.BlockSpec((1, N, N), lambda b: (b, 0, 0)),
            pl.BlockSpec(fused["wi"].shape, lambda b: (0, 0)),
            pl.BlockSpec(fused["wj"].shape, lambda b: (0, 0)),
            pl.BlockSpec(fused["bpre"].shape, lambda b: (0, 0)),
            pl.BlockSpec(fused["wx"].shape, lambda b: (0, 0)),
            pl.BlockSpec(fused["wid"].shape, lambda b: (0, 0)),
            pl.BlockSpec(fused["wamp"].shape, lambda b: (0, 0)),
            pl.BlockSpec(fused["watt"].shape, lambda b: (0, 0)),
            pl.BlockSpec(fused["bpost"].shape, lambda b: (0, 0)),
            pl.BlockSpec(fused["wmix"].shape, lambda b: (0, 0)),
            pl.BlockSpec(fused["bmix"].shape, lambda b: (0, 0)),
        ],
        out_specs=pl.BlockSpec((1, N, doutp), lambda b: (b, 0, 0)),
        compiler_params=pltpu.CompilerParams(dimension_semantics=("parallel",)),
    )(x_packed, adj, fused["wi"], fused["wj"], fused["bpre"], fused["wx"],
      fused["wid"], fused["wamp"], fused["watt"], fused["bpost"],
      fused["wmix"], fused["bmix"])
    return out_p[:, :, :dout]


# --------------------- pure-JAX dense reference (for checking) ---------------


def pna_layer_reference(params, x, adj, *, divide_input, avg_d_log):
    towers = len(params["towers"])
    in_features = x.shape[-1]
    din_t = in_features // towers if divide_input else in_features
    deg = jnp.sum(adj, axis=-1, keepdims=True)                # (B, N, 1)
    log_d = jnp.log(deg + 1.0)
    adj_e = adj[..., None]
    ys = []
    for t, (wpre, bpre, wpost, bpost) in enumerate(params["towers"]):
        x_t = x[..., t * din_t:(t + 1) * din_t] if divide_input else x
        B, N, _ = x_t.shape
        h_i = jnp.broadcast_to(x_t[:, :, None, :], (B, N, N, din_t))
        h_j = jnp.broadcast_to(x_t[:, None, :, :], (B, N, N, din_t))
        h = jnp.einsum('bijk,kf->bijf', jnp.concatenate([h_i, h_j], axis=-1), wpre) + bpre
        mean = jnp.sum(h * adj_e, axis=2) / deg
        mx = jnp.max(jnp.where(adj_e > 0, h, -jnp.inf), axis=2)
        mn = jnp.min(jnp.where(adj_e > 0, h, jnp.inf), axis=2)
        var = jnp.maximum(jnp.sum(h * h * adj_e, axis=2) / deg - mean * mean, 0.0)
        std = jnp.sqrt(var + EPS)
        m = jnp.concatenate([mean, mx, mn, std], axis=-1)
        m = jnp.concatenate([m, m * (log_d / avg_d_log), m * (avg_d_log / log_d)], axis=-1)
        m_cat = jnp.concatenate([x_t, m], axis=-1)
        ys.append(jnp.einsum('bnk,kf->bnf', m_cat, wpost) + bpost)
    y = jnp.concatenate(ys, axis=-1)
    z = jnp.einsum('bnk,kf->bnf', y, params["wmix"]) + params["bmix"]
    return jnp.where(z > 0.0, z, LEAKY_SLOPE * z)


# --------------------------------- main --------------------------------------

if __name__ == "__main__":
    key = jax.random.PRNGKey(0)
    B, N = 2, 8
    in_features, out_features, towers = 32, 32, 2

    k_x, k_adj, k_p = jax.random.split(key, 3)
    x = _bf16_grid(jax.random.normal(k_x, (B, N, in_features), jnp.float32))

    # random binary adjacency; add a ring so every node has degree >= 1
    adj = (jax.random.uniform(k_adj, (B, N, N)) > 0.4).astype(jnp.float32)
    ring = jnp.eye(N, k=1, dtype=jnp.float32) + jnp.eye(N, k=-(N - 1), dtype=jnp.float32)
    adj = jnp.maximum(adj, ring[None])

    # avg_d["log"]: average of log(degree + 1), as in the reference training setup
    avg_d_log = float(jnp.mean(jnp.log(jnp.sum(adj, axis=-1) + 1.0)))

    params = init_pna_layer(k_p, in_features, out_features, towers)
    fused = build_fused_params(params, towers=towers, in_features=in_features,
                               out_features=out_features, divide_input=True)

    out = pna_layer_forward(x, adj, fused, avg_d_log=avg_d_log)
    out = jax.block_until_ready(out)
    assert out.shape == (B, N, out_features)
    assert bool(jnp.all(jnp.isfinite(out)))

    ref = pna_layer_reference(params, x, adj, divide_input=True, avg_d_log=avg_d_log)
    assert bool(jnp.allclose(out, ref, rtol=2e-2, atol=2e-2)), \
        float(jnp.max(jnp.abs(out - ref)))
    print("KERNEL_OK")
</pallas_src>

<mosaic_0001>
module attributes {stable_mosaic.version = 11 : i64} {
  func.func @pna_fused_kernel(%arg0: i32, %arg1: memref<1x8x128xf32, #tpu.memory_space<vmem>>, %arg2: memref<1x8x8xf32, #tpu.memory_space<vmem>>, %arg3: memref<128x128xf32, #tpu.memory_space<vmem>>, %arg4: memref<128x128xf32, #tpu.memory_space<vmem>>, %arg5: memref<1x128xf32, #tpu.memory_space<vmem>>, %arg6: memref<128x128xf32, #tpu.memory_space<vmem>>, %arg7: memref<512x128xf32, #tpu.memory_space<vmem>>, %arg8: memref<512x128xf32, #tpu.memory_space<vmem>>, %arg9: memref<512x128xf32, #tpu.memory_space<vmem>>, %arg10: memref<1x128xf32, #tpu.memory_space<vmem>>, %arg11: memref<128x128xf32, #tpu.memory_space<vmem>>, %arg12: memref<1x128xf32, #tpu.memory_space<vmem>>, %arg13: memref<1x8x128xf32, #tpu.memory_space<vmem>>) attributes {dimension_semantics = [#tpu.dimension_semantics<parallel>], iteration_bounds = array<i64: 2>, scalar_prefetch = 0 : i64, scratch_operands = 0 : i64, tpu.core_type = #tpu.core_type<tc>, window_params = [{transform_indices = @transform_0, window_bounds = array<i64: 1, 8, 128>}, {transform_indices = @transform_1, window_bounds = array<i64: 1, 8, 8>}, {pipeline_mode = #tpu.pipeline_mode<synchronous>, transform_indices = @transform_2, window_bounds = array<i64: 128, 128>}, {pipeline_mode = #tpu.pipeline_mode<synchronous>, transform_indices = @transform_3, window_bounds = array<i64: 128, 128>}, {pipeline_mode = #tpu.pipeline_mode<synchronous>, transform_indices = @transform_4, window_bounds = array<i64: 1, 128>}, {pipeline_mode = #tpu.pipeline_mode<synchronous>, transform_indices = @transform_5, window_bounds = array<i64: 128, 128>}, {pipeline_mode = #tpu.pipeline_mode<synchronous>, transform_indices = @transform_6, window_bounds = array<i64: 512, 128>}, {pipeline_mode = #tpu.pipeline_mode<synchronous>, transform_indices = @transform_7, window_bounds = array<i64: 512, 128>}, {pipeline_mode = #tpu.pipeline_mode<synchronous>, transform_indices = @transform_8, window_bounds = array<i64: 512, 128>}, {pipeline_mode = #tpu.pipeline_mode<synchronous>, transform_indices = @transform_9, window_bounds = array<i64: 1, 128>}, {pipeline_mode = #tpu.pipeline_mode<synchronous>, transform_indices = @transform_10, window_bounds = array<i64: 128, 128>}, {pipeline_mode = #tpu.pipeline_mode<synchronous>, transform_indices = @transform_11, window_bounds = array<i64: 1, 128>}, {transform_indices = @transform_12, window_bounds = array<i64: 1, 8, 128>}]} {
    %c0 = arith.constant 0 : index
    %c0_0 = arith.constant 0 : index
    %c0_1 = arith.constant 0 : index
    %0 = vector.load %arg1[%c0, %c0_0, %c0_1] : memref<1x8x128xf32, #tpu.memory_space<vmem>>, vector<1x8x128xf32>
    %1 = vector.shape_cast %0 : vector<1x8x128xf32> to vector<8x128xf32>
    %c0_2 = arith.constant 0 : index
    %c0_3 = arith.constant 0 : index
    %c0_4 = arith.constant 0 : index
    %2 = vector.load %arg2[%c0_2, %c0_3, %c0_4] : memref<1x8x8xf32, #tpu.memory_space<vmem>>, vector<1x8x8xf32>
    %3 = vector.shape_cast %2 : vector<1x8x8xf32> to vector<8x8xf32>
    %c0_5 = arith.constant 0 : index
    %c0_6 = arith.constant 0 : index
    %4 = vector.load %arg3[%c0_5, %c0_6] : memref<128x128xf32, #tpu.memory_space<vmem>>, vector<128x128xf32>
    %cst = arith.constant dense<0.000000e+00> : vector<8x128xf32>
    %5 = tpu.matmul %1, %4, %cst {dimension_numbers = #tpu.dot_dimension_numbers<[1], [0], [0], [1], [0, 0, 1, 1], [], []>} : vector<8x128xf32>, vector<128x128xf32>, vector<8x128xf32> -> vector<8x128xf32>
    %c0_7 = arith.constant 0 : index
    %c0_8 = arith.constant 0 : index
    %6 = vector.load %arg4[%c0_7, %c0_8] : memref<128x128xf32, #tpu.memory_space<vmem>>, vector<128x128xf32>
    %cst_9 = arith.constant dense<0.000000e+00> : vector<8x128xf32>
    %7 = tpu.matmul %1, %6, %cst_9 {dimension_numbers = #tpu.dot_dimension_numbers<[1], [0], [0], [1], [0, 0, 1, 1], [], []>} : vector<8x128xf32>, vector<128x128xf32>, vector<8x128xf32> -> vector<8x128xf32>
    %c0_10 = arith.constant 0 : index
    %c0_11 = arith.constant 0 : index
    %8 = vector.load %arg5[%c0_10, %c0_11] : memref<1x128xf32, #tpu.memory_space<vmem>>, vector<1x128xf32>
    %9 = vector.broadcast %8 : vector<1x128xf32> to vector<8x128xf32>
    %10 = arith.addf %5, %9 : vector<8x128xf32>
    %cst_12 = arith.constant dense<0.000000e+00> : vector<8xf32>
    %11 = vector.multi_reduction <add>, %3, %cst_12 [1] : vector<8x8xf32> to vector<8xf32>
    %12 = vector.shape_cast %11 : vector<8xf32> to vector<8x1xf32>
    %cst_13 = arith.constant 0.000000e+00 : f32
    %13 = vector.broadcast %cst_13 : f32 to vector<8x1xf32>
    %14 = arith.cmpf ogt, %12, %13 : vector<8x1xf32>
    %cst_14 = arith.constant 1.000000e+00 : f32
    %15 = vector.broadcast %cst_14 : f32 to vector<8x1xf32>
    %16 = arith.maximumf %12, %15 : vector<8x1xf32>
    %17 = tpu.reciprocal %16 {approx = true} : vector<8x1xf32> -> vector<8x1xf32>
    %cst_15 = arith.constant dense<0.000000e+00> : vector<8x128xf32>
    %18 = tpu.matmul %3, %7, %cst_15 {dimension_numbers = #tpu.dot_dimension_numbers<[1], [0], [0], [1], [0, 0, 1, 1], [], []>} : vector<8x8xf32>, vector<8x128xf32>, vector<8x128xf32> -> vector<8x128xf32>
    %19 = arith.mulf %7, %7 : vector<8x128xf32>
    %cst_16 = arith.constant dense<0.000000e+00> : vector<8x128xf32>
    %20 = tpu.matmul %3, %19, %cst_16 {dimension_numbers = #tpu.dot_dimension_numbers<[1], [0], [0], [1], [0, 0, 1, 1], [], []>} : vector<8x8xf32>, vector<8x128xf32>, vector<8x128xf32> -> vector<8x128xf32>
    %21 = vector.broadcast %17 : vector<8x1xf32> to vector<8x128xf32>
    %22 = arith.mulf %18, %21 : vector<8x128xf32>
    %23 = arith.addf %10, %22 : vector<8x128xf32>
    %24 = arith.mulf %10, %10 : vector<8x128xf32>
    %cst_17 = arith.constant 2.000000e+00 : f32
    %25 = vector.broadcast %cst_17 : f32 to vector<8x128xf32>
    %26 = arith.mulf %25, %10 : vector<8x128xf32>
    %27 = arith.mulf %26, %18 : vector<8x128xf32>
    %28 = arith.addf %27, %20 : vector<8x128xf32>
    %29 = vector.broadcast %17 : vector<8x1xf32> to vector<8x128xf32>
    %30 = arith.mulf %28, %29 : vector<8x128xf32>
    %31 = arith.addf %24, %30 : vector<8x128xf32>
    %32 = arith.mulf %23, %23 : vector<8x128xf32>
    %33 = arith.subf %31, %32 : vector<8x128xf32>
    %cst_18 = arith.constant 0.000000e+00 : f32
    %34 = vector.broadcast %cst_18 : f32 to vector<8x128xf32>
    %35 = arith.maximumf %33, %34 : vector<8x128xf32>
    %cst_19 = arith.constant 9.99999974E-6 : f32
    %36 = vector.broadcast %cst_19 : f32 to vector<8x128xf32>
    %37 = arith.addf %35, %36 : vector<8x128xf32>
    %38 = math.sqrt %37 : vector<8x128xf32>
    %cst_20 = arith.constant 0xFF800000 : f32
    %39 = vector.broadcast %cst_20 : f32 to vector<8x128xf32>
    %cst_21 = arith.constant 0x7F800000 : f32
    %40 = vector.broadcast %cst_21 : f32 to vector<8x128xf32>
    %41 = vector.shape_cast %3 : vector<8x8xf32> to vector<8x8x1xf32>
    %cst_22 = arith.constant 0.000000e+00 : f32
    %42 = vector.broadcast %cst_22 : f32 to vector<8x8x1xf32>
    %43 = arith.cmpf ogt, %41, %42 : vector<8x8x1xf32>
    %44 = vector.shape_cast %7 : vector<8x128xf32> to vector<1x8x128xf32>
    %cst_23 = arith.constant 0xFF800000 : f32
    %45 = vector.shape_cast %43 : vector<8x8x1xi1> to vector<8x8x1xi1>
    %46 = vector.broadcast %45 : vector<8x8x1xi1> to vector<8x8x128xi1>
    %47 = vector.shape_cast %44 : vector<1x8x128xf32> to vector<1x8x128xf32>
    %48 = vector.broadcast %47 : vector<1x8x128xf32> to vector<8x8x128xf32>
    %49 = vector.broadcast %cst_23 : f32 to vector<8x8x128xf32>
    %50 = arith.select %46, %48, %49 : vector<8x8x128xi1>, vector<8x8x128xf32>
    %cst_24 = arith.constant dense<0xFF800000> : vector<8x128xf32>
    %51 = vector.multi_reduction <maximumf>, %50, %cst_24 [1] : vector<8x8x128xf32> to vector<8x128xf32>
    %52 = arith.maximumf %39, %51 : vector<8x128xf32>
    %cst_25 = arith.constant 0x7F800000 : f32
    %53 = vector.shape_cast %43 : vector<8x8x1xi1> to vector<8x8x1xi1>
    %54 = vector.broadcast %53 : vector<8x8x1xi1> to vector<8x8x128xi1>
    %55 = vector.shape_cast %44 : vector<1x8x128xf32> to vector<1x8x128xf32>
    %56 = vector.broadcast %55 : vector<1x8x128xf32> to vector<8x8x128xf32>
    %57 = vector.broadcast %cst_25 : f32 to vector<8x8x128xf32>
    %58 = arith.select %54, %56, %57 : vector<8x8x128xi1>, vector<8x8x128xf32>
    %cst_26 = arith.constant dense<0x7F800000> : vector<8x128xf32>
    %59 = vector.multi_reduction <minimumf>, %58, %cst_26 [1] : vector<8x8x128xf32> to vector<8x128xf32>
    %60 = arith.minimumf %40, %59 : vector<8x128xf32>
    %cst_27 = arith.constant 0.000000e+00 : f32
    %61 = vector.shape_cast %14 : vector<8x1xi1> to vector<8x1xi1>
    %62 = vector.broadcast %61 : vector<8x1xi1> to vector<8x128xi1>
    %63 = vector.broadcast %cst_27 : f32 to vector<8x128xf32>
    %64 = arith.select %62, %52, %63 : vector<8x128xi1>, vector<8x128xf32>
    %cst_28 = arith.constant 0.000000e+00 : f32
    %65 = vector.shape_cast %14 : vector<8x1xi1> to vector<8x1xi1>
    %66 = vector.broadcast %65 : vector<8x1xi1> to vector<8x128xi1>
    %67 = vector.broadcast %cst_28 : f32 to vector<8x128xf32>
    %68 = arith.select %66, %60, %67 : vector<8x128xi1>, vector<8x128xf32>
    %69 = arith.addf %10, %64 : vector<8x128xf32>
    %70 = arith.addf %10, %68 : vector<8x128xf32>
    %cst_29 = arith.constant 1.000000e+00 : f32
    %71 = vector.broadcast %cst_29 : f32 to vector<8x1xf32>
    %72 = arith.addf %12, %71 : vector<8x1xf32>
    %73 = math.log %72 : vector<8x1xf32>
    %cst_30 = arith.constant 0.575935125 : f32
    %74 = vector.broadcast %cst_30 : f32 to vector<8x1xf32>
    %75 = arith.mulf %73, %74 : vector<8x1xf32>
    %cst_31 = arith.constant 1.000000e+00 : f32
    %76 = vector.broadcast %cst_31 : f32 to vector<8x1xf32>
    %77 = arith.select %14, %73, %76 : vector<8x1xi1>, vector<8x1xf32>
    %78 = tpu.reciprocal %77 {approx = true} : vector<8x1xf32> -> vector<8x1xf32>
    %cst_32 = arith.constant 1.73630667 : f32
    %79 = vector.broadcast %cst_32 : f32 to vector<8x1xf32>
    %80 = arith.mulf %79, %78 : vector<8x1xf32>
    %81 = tpu.concatenate %23, %69, %70, %38 in 1 : vector<8x128xf32>, vector<8x128xf32>, vector<8x128xf32>, vector<8x128xf32> -> vector<8x512xf32>
    %c0_33 = arith.constant 0 : index
    %c0_34 = arith.constant 0 : index
    %82 = vector.load %arg6[%c0_33, %c0_34] : memref<128x128xf32, #tpu.memory_space<vmem>>, vector<128x128xf32>
    %cst_35 = arith.constant dense<0.000000e+00> : vector<8x128xf32>
    %83 = tpu.matmul %1, %82, %cst_35 {dimension_numbers = #tpu.dot_dimension_numbers<[1], [0], [0], [1], [0, 0, 1, 1], [], []>} : vector<8x128xf32>, vector<128x128xf32>, vector<8x128xf32> -> vector<8x128xf32>
    %c0_36 = arith.constant 0 : index
    %c0_37 = arith.constant 0 : index
    %84 = vector.load %arg7[%c0_36, %c0_37] : memref<512x128xf32, #tpu.memory_space<vmem>>, vector<512x128xf32>
    %cst_38 = arith.constant dense<0.000000e+00> : vector<8x128xf32>
    %85 = tpu.matmul %81, %84, %cst_38 {dimension_numbers = #tpu.dot_dimension_numbers<[1], [0], [0], [1], [0, 0, 1, 1], [], []>} : vector<8x512xf32>, vector<512x128xf32>, vector<8x128xf32> -> vector<8x128xf32>
    %c0_39 = arith.constant 0 : index
    %c0_40 = arith.constant 0 : index
    %86 = vector.load %arg8[%c0_39, %c0_40] : memref<512x128xf32, #tpu.memory_space<vmem>>, vector<512x128xf32>
    %cst_41 = arith.constant dense<0.000000e+00> : vector<8x128xf32>
    %87 = tpu.matmul %81, %86, %cst_41 {dimension_numbers = #tpu.dot_dimension_numbers<[1], [0], [0], [1], [0, 0, 1, 1], [], []>} : vector<8x512xf32>, vector<512x128xf32>, vector<8x128xf32> -> vector<8x128xf32>
    %c0_42 = arith.constant 0 : index
    %c0_43 = arith.constant 0 : index
    %88 = vector.load %arg9[%c0_42, %c0_43] : memref<512x128xf32, #tpu.memory_space<vmem>>, vector<512x128xf32>
    %cst_44 = arith.constant dense<0.000000e+00> : vector<8x128xf32>
    %89 = tpu.matmul %81, %88, %cst_44 {dimension_numbers = #tpu.dot_dimension_numbers<[1], [0], [0], [1], [0, 0, 1, 1], [], []>} : vector<8x512xf32>, vector<512x128xf32>, vector<8x128xf32> -> vector<8x128xf32>
    %90 = arith.addf %83, %85 : vector<8x128xf32>
    %91 = vector.broadcast %75 : vector<8x1xf32> to vector<8x128xf32>
    %92 = arith.mulf %91, %87 : vector<8x128xf32>
    %93 = arith.addf %90, %92 : vector<8x128xf32>
    %94 = vector.broadcast %80 : vector<8x1xf32> to vector<8x128xf32>
    %95 = arith.mulf %94, %89 : vector<8x128xf32>
    %96 = arith.addf %93, %95 : vector<8x128xf32>
    %c0_45 = arith.constant 0 : index
    %c0_46 = arith.constant 0 : index
    %97 = vector.load %arg10[%c0_45, %c0_46] : memref<1x128xf32, #tpu.memory_space<vmem>>, vector<1x128xf32>
    %98 = vector.broadcast %97 : vector<1x128xf32> to vector<8x128xf32>
    %99 = arith.addf %96, %98 : vector<8x128xf32>
    %c0_47 = arith.constant 0 : index
    %c0_48 = arith.constant 0 : index
    %100 = vector.load %arg11[%c0_47, %c0_48] : memref<128x128xf32, #tpu.memory_space<vmem>>, vector<128x128xf32>
    %cst_49 = arith.constant dense<0.000000e+00> : vector<8x128xf32>
    %101 = tpu.matmul %99, %100, %cst_49 {dimension_numbers = #tpu.dot_dimension_numbers<[1], [0], [0], [1], [0, 0, 1, 1], [], []>} : vector<8x128xf32>, vector<128x128xf32>, vector<8x128xf32> -> vector<8x128xf32>
    %c0_50 = arith.constant 0 : index
    %c0_51 = arith.constant 0 : index
    %102 = vector.load %arg12[%c0_50, %c0_51] : memref<1x128xf32, #tpu.memory_space<vmem>>, vector<1x128xf32>
    %103 = vector.broadcast %102 : vector<1x128xf32> to vector<8x128xf32>
    %104 = arith.addf %101, %103 : vector<8x128xf32>
    %cst_52 = arith.constant 0.000000e+00 : f32
    %105 = vector.broadcast %cst_52 : f32 to vector<8x128xf32>
    %106 = arith.cmpf ogt, %104, %105 : vector<8x128xf32>
    %cst_53 = arith.constant 0.00999999977 : f32
    %107 = vector.broadcast %cst_53 : f32 to vector<8x128xf32>
    %108 = arith.mulf %107, %104 : vector<8x128xf32>
    %109 = arith.select %106, %104, %108 : vector<8x128xi1>, vector<8x128xf32>
    %c0_54 = arith.constant 0 : index
    %c0_55 = arith.constant 0 : index
    %c0_56 = arith.constant 0 : index
    %110 = vector.load %arg13[%c0_54, %c0_55, %c0_56] : memref<1x8x128xf32, #tpu.memory_space<vmem>>, vector<1x8x128xf32>
    %111 = vector.shape_cast %110 : vector<1x8x128xf32> to vector<8x128xf32>
    %112 = vector.shape_cast %109 : vector<8x128xf32> to vector<1x8x128xf32>
    tpu.vector_store %arg13[%c0_54, %c0_55, %c0_56], %112 {strides = array<i32>} : memref<1x8x128xf32, #tpu.memory_space<vmem>>, vector<1x8x128xf32>,
    return
  }
  func.func @transform_0(%arg0: i32) -> (i32, i32, i32) {
    %c0_i32 = arith.constant 0 : i32
    %c0_i32_0 = arith.constant 0 : i32
    %c0_i32_1 = arith.constant 0 : i32
    return %arg0, %c0_i32, %c0_i32_0 : i32, i32, i32
  }
  func.func @transform_1(%arg0: i32) -> (i32, i32, i32) {
    %c0_i32 = arith.constant 0 : i32
    %c0_i32_0 = arith.constant 0 : i32
    %c0_i32_1 = arith.constant 0 : i32
    return %arg0, %c0_i32, %c0_i32_0 : i32, i32, i32
  }
  func.func @transform_2(%arg0: i32) -> (i32, i32) {
    %c0_i32 = arith.constant 0 : i32
    %c0_i32_0 = arith.constant 0 : i32
    %c0_i32_1 = arith.constant 0 : i32
    return %c0_i32, %c0_i32_0 : i32, i32
  }
  func.func @transform_3(%arg0: i32) -> (i32, i32) {
    %c0_i32 = arith.constant 0 : i32
    %c0_i32_0 = arith.constant 0 : i32
    %c0_i32_1 = arith.constant 0 : i32
    return %c0_i32, %c0_i32_0 : i32, i32
  }
  func.func @transform_4(%arg0: i32) -> (i32, i32) {
    %c0_i32 = arith.constant 0 : i32
    %c0_i32_0 = arith.constant 0 : i32
    %c0_i32_1 = arith.constant 0 : i32
    return %c0_i32, %c0_i32_0 : i32, i32
  }
  func.func @transform_5(%arg0: i32) -> (i32, i32) {
    %c0_i32 = arith.constant 0 : i32
    %c0_i32_0 = arith.constant 0 : i32
    %c0_i32_1 = arith.constant 0 : i32
    return %c0_i32, %c0_i32_0 : i32, i32
  }
  func.func @transform_6(%arg0: i32) -> (i32, i32) {
    %c0_i32 = arith.constant 0 : i32
    %c0_i32_0 = arith.constant 0 : i32
    %c0_i32_1 = arith.constant 0 : i32
    return %c0_i32, %c0_i32_0 : i32, i32
  }
  func.func @transform_7(%arg0: i32) -> (i32, i32) {
    %c0_i32 = arith.constant 0 : i32
    %c0_i32_0 = arith.constant 0 : i32
    %c0_i32_1 = arith.constant 0 : i32
    return %c0_i32, %c0_i32_0 : i32, i32
  }
  func.func @transform_8(%arg0: i32) -> (i32, i32) {
    %c0_i32 = arith.constant 0 : i32
    %c0_i32_0 = arith.constant 0 : i32
    %c0_i32_1 = arith.constant 0 : i32
    return %c0_i32, %c0_i32_0 : i32, i32
  }
  func.func @transform_9(%arg0: i32) -> (i32, i32) {
    %c0_i32 = arith.constant 0 : i32
    %c0_i32_0 = arith.constant 0 : i32
    %c0_i32_1 = arith.constant 0 : i32
    return %c0_i32, %c0_i32_0 : i32, i32
  }
  func.func @transform_10(%arg0: i32) -> (i32, i32) {
    %c0_i32 = arith.constant 0 : i32
    %c0_i32_0 = arith.constant 0 : i32
    %c0_i32_1 = arith.constant 0 : i32
    return %c0_i32, %c0_i32_0 : i32, i32
  }
  func.func @transform_11(%arg0: i32) -> (i32, i32) {
    %c0_i32 = arith.constant 0 : i32
    %c0_i32_0 = arith.constant 0 : i32
    %c0_i32_1 = arith.constant 0 : i32
    return %c0_i32, %c0_i32_0 : i32, i32
  }
  func.func @transform_12(%arg0: i32) -> (i32, i32, i32) {
    %c0_i32 = arith.constant 0 : i32
    %c0_i32_0 = arith.constant 0 : i32
    %c0_i32_1 = arith.constant 0 : i32
    return %arg0, %c0_i32, %c0_i32_0 : i32, i32, i32
  }
}

</mosaic_0001>

<bundles_post_ra>
// kernel: tpu_custom_call.1
= control target key start
LH: loop header
LB: loop body
LE: loop exit
PB: predicated region body
PF: predicated region fallthrough
CT: control target
= control target key end

     0   :  { %s3697_s0 = inlined_call_operand.hbm [shape: f32[2,8,128], index: 0, kind: input, shape index: {}]   ;;  %s3698_s1 = inlined_call_operand.hbm [shape: f32[2,8,8], index: 1, kind: input, shape index: {}]   ;;  %s3699_s2 = inlined_call_operand.hbm [shape: f32[128,128], index: 2, kind: input, shape index: {}]   ;;  %s3700_s3 = inlined_call_operand.hbm [shape: f32[128,128], index: 3, kind: input, shape index: {}]   ;;  %s3701_s4 = inlined_call_operand.vmem [shape: f32[1,128], index: 4, kind: input, shape index: {}]   ;;  %s3702_s5 = inlined_call_operand.hbm [shape: f32[128,128], index: 5, kind: input, shape index: {}]   ;;  %s3703_s6 = inlined_call_operand.hbm [shape: f32[512,128], index: 6, kind: input, shape index: {}]   ;;  %s3704_s7 = inlined_call_operand.hbm [shape: f32[512,128], index: 7, kind: input, shape index: {}]   ;;  %s3705_s8 = inlined_call_operand.hbm [shape: f32[512,128], index: 8, kind: input, shape index: {}]   ;;  %s3706_s9 = inlined_call_operand.vmem [shape: f32[1,128], index: 9, kind: input, shape index: {}]   ;;  %s3707_s10 = inlined_call_operand.hbm [shape: f32[128,128], index: 10, kind: input, shape index: {}]   ;;  %s3708_s11 = inlined_call_operand.vmem [shape: f32[1,128], index: 11, kind: input, shape index: {}]   ;;  %s3709_s12 = inlined_call_operand.hbm [shape: f32[2,8,128], index: 12, kind: output, shape index: {}]  }
   0x1   :  { %3717 = sst [smem:[#allocation27_spill]] %s3699_s2 }
   0x2   :  { %3718 = sst [smem:[#allocation28_spill]] %s3700_s3 }
   0x3   :  { %3719 = sst [smem:[#allocation29_spill]] %s3702_s5 }
   0x4   :  { %3720 = sst [smem:[#allocation30_spill]] %s3703_s6 }
   0x5   :  { %3721 = sst [smem:[#allocation31_spill]] %s3704_s7 }
   0x6   :  { %3722 = sst [smem:[#allocation32_spill]] %s3705_s8 }
   0x7   :  { %3723 = sst [smem:[#allocation33_spill]] %s3707_s10 }
   0x8   :  { %17 = vsyncpa [#allocation3], 0 }
   0x9   :  { %19 = vsyncpa [#allocation3 + $0x1], 0 }
   0xa   :  { %20 = vsyncpa [#allocation6], 0 }
   0xb   :  { %22 = vsyncpa [#allocation6 + $0x1], 0 }
   0xc   :  { %23 = vsyncpa [#allocation9], 0 }
   0xd   :  { %24 = vsyncpa [#allocation12], 0 }
   0xe   :  { %25 = vsyncpa [#allocation15], 0 }
   0xf   :  { %26 = vsyncpa [#allocation4], 0 }
  0x10   :  { %28 = vsyncpa [#allocation4 + $0x1], 0  ;;  %s3146_s21 = smov 0   ;;  %s3148_s22 = smov 0  }
  0x11   :  { %s3150_s23 = smov 0   ;;  %s3152_s24 = smov 0  }
  0x12 LB: > { %3724 = sst [smem:[#allocation25_spill]] %s3061_s23  ;;  %s3067_s25 = smov [#allocation7]   ;;  %s3065_s24 = sphi %s3152_s24, %s3758_s24   ;;  %s3061_s23 = sphi %s3150_s23, %s3755_s23   ;;  %s3057_s22 = sphi %s3148_s22, %s3757_s22   ;;  %s3053_s21 = sphi %s3146_s21, %s3756_s21  }
  0x13   : > { %s339_s26 = sshll.u32 %s3067_s25, 4  ;;  %s3167_s27 = sadd.s32 4294967295, %s3065_s24   ;;  %s340_s26 = int_to_ptr.vmem [resolvable:$true] %s339_s26 }
  0x14   : > { %p2143_p0 = scmp.ge.s32.totalorder %s3065_s24, 1  ;;  %p3711_p1 = scmp.eq.s32.totalorder %s3167_s27, 0 }
  0x15   : > { %p327_p2 = scmp.lt.s32.totalorder %s3065_s24, 3  ;;  %s3068_s29 = smov [#allocation8]  }
  0x16   : > { %s352_s30 = sshll.u32 %s3068_s29, 4  ;;  %s3069_s14 = smov [#allocation11]   ;;  %s3185_s30 = int_to_ptr.vmem [resolvable:$true] %s352_s30 }
  0x17   : > { %p3172_p3 = pnand %p2143_p0, %p327_p2  ;;  %s381_s15 = sshll.u32 %s3069_s14, 4  ;;  %s3187_s15 = int_to_ptr.vmem [resolvable:$true] %s381_s15 }
  0x18   : > { %s2754_s17 = scalar_lea.vmem %s340_s26, 2048  ;;  %p2762_p11 = scmp.lt.s32.totalorder %s340_s26, %s340_s26 }
  0x19   : > { %s3725_s28 = scalar_select %p3172_p3, 1, 0 }
  0x1a   : > { %p2642_p5 = pneg %p3172_p3  ;;  %p2755_p8 = scmp.ne.s32.totalorder %s340_s26, %s2754_s17 }
  0x1b   : > { %p2763_p12 = scmp.lt.s32.totalorder %s2754_s17, %s2754_s17 }
  0x1c   : > { %p3181_p6 = pnand %p2642_p5, %p3711_p1 }
  0x1d   : > { %p2764_p13 = por %p2763_p12, %p2762_p11 }
  0x1e   : > { %p3191_p7 = pneg %p3181_p6 }
  0x20   : > { %p2757_p9 = pnand %p2755_p8, %p3191_p7 }
  0x22   : > { %p2758_p10 = pneg %p2757_p9 }
  0x24   : > { %p2765_p0 = pnand %p2764_p13, %p2758_p10 }
  0x26   : > { %2768 = shalt.err (!%p2765_p0)
}
  0x27   : > { %s3070_s18 = smov 128   ;;  %s3071_s19 = smov 8  }
  0x28   : > { %s3728_s2 = sld [smem:[#allocation27_spill]]  ;;  %s2780_s29 = scalar_lea.vmem %s3185_s30, 2048 }
  0x29   : > { %p2781_p2 = scmp.ne.s32.totalorder %s3185_s30, %s2780_s29  ;;  %p2788_p9 = scmp.lt.s32.totalorder %s3185_s30, %s3185_s30 }
  0x2a   : > { %p2789_p10 = scmp.lt.s32.totalorder %s2780_s29, %s2780_s29 }
  0x2b   : > { %p2783_p5 = pnand %p2781_p2, %p3191_p7 }
  0x2c   : > { %p2790_p11 = por %p2789_p10, %p2788_p9 }
  0x2d   : > { %p2784_p8 = pneg %p2783_p5 }
  0x2e   : > { %2645 = dma.hbm_to_vmem [thread:$0]  (!%p3181_p6), %s3728_s2, 2048, %s340_s26, [#allocation6], %s3070_s18, %s3070_s18, %s3071_s19  }
  0x2f   : > { %p2791_p12 = pnand %p2790_p11, %p2784_p8 }
  0x31   : > { %2794 = shalt.err (!%p2791_p12)
}
  0x32   : > { %s3729_s3 = sld [smem:[#allocation28_spill]]  ;;  %s2806_s26 = scalar_lea.vmem %s3187_s15, 8192 }
  0x33   : > { %p2807_p13 = scmp.ne.s32.totalorder %s3187_s15, %s2806_s26  ;;  %p2814_p5 = scmp.lt.s32.totalorder %s3187_s15, %s3187_s15 }
  0x34   : > { %p2815_p8 = scmp.lt.s32.totalorder %s2806_s26, %s2806_s26 }
  0x35   : > { %p2809_p0 = pnand %p2807_p13, %p3191_p7 }
  0x36   : > { %p2816_p9 = por %p2815_p8, %p2814_p5 }
  0x37   : > { %p2810_p2 = pneg %p2809_p0 }
  0x38   : > { %2648 = dma.hbm_to_vmem [thread:$0]  (!%p3181_p6), %s3729_s3, 2048, %s3185_s30, [#allocation9], %s3070_s18, %s3070_s18, %s3071_s19  }
  0x39   : > { %p2817_p10 = pnand %p2816_p9, %p2810_p2 }
  0x3b   : > { %2820 = shalt.err (!%p2817_p10)
}
  0x3c   : > { %s3730_s6 = sld [smem:[#allocation30_spill]]  ;;  %s3072_s30 = smov [#allocation14]  }
  0x3d   : > { %s407_s29 = sshll.u32 %s3072_s30, 4  ;;  %s3073_s14 = smov [#allocation10]   ;;  %s408_s29 = int_to_ptr.vmem [resolvable:$true] %s407_s29 }
  0x3e   : > { %s368_s17 = sshll.u32 %s3073_s14, 4  ;;  %s2832_s26 = scalar_lea.vmem %s408_s29, 8192  ;;  %s369_s17 = int_to_ptr.vmem [resolvable:$true] %s368_s17 }
  0x3f   : > { %p2833_p11 = scmp.ne.s32.totalorder %s408_s29, %s2832_s26  ;;  %p2840_p0 = scmp.lt.s32.totalorder %s408_s29, %s408_s29 }
  0x40   : > { %p2841_p2 = scmp.lt.s32.totalorder %s2832_s26, %s2832_s26 }
  0x41   : > { %p2835_p12 = pnand %p2833_p11, %p3191_p7 }
  0x42   : > { %2654 = dma.hbm_to_vmem [thread:$0]  (!%p3181_p6), %s3730_s6, 8192, %s3187_s15, [#allocation12], %s3070_s18, %s3070_s18, %s3071_s19  }
  0x43   : > { %p2836_p13 = pneg %p2835_p12  ;;  %p2842_p5 = por %p2841_p2, %p2840_p0 }
  0x45   : > { %p2843_p8 = pnand %p2842_p5, %p2836_p13 }
  0x47   : > { %2846 = shalt.err (!%p2843_p8)
}
  0x48   : > { %s3731_s8 = sld [smem:[#allocation32_spill]]  ;;  %s2858_s25 = scalar_lea.vmem %s369_s17, 2048 }
  0x49   : > { %p2859_p9 = scmp.ne.s32.totalorder %s369_s17, %s2858_s25  ;;  %p2866_p12 = scmp.lt.s32.totalorder %s369_s17, %s369_s17 }
  0x4a   : > { %p2867_p0 = scmp.lt.s32.totalorder %s2858_s25, %s2858_s25 }
  0x4b   : > { %p2861_p10 = pnand %p2859_p9, %p3191_p7 }
  0x4c   : > { %p2868_p13 = por %p2867_p0, %p2866_p12 }
  0x4d   : > { %p2862_p11 = pneg %p2861_p10 }
  0x4e   : > { %2660 = dma.hbm_to_vmem [thread:$0]  (!%p3181_p6), %s3731_s8, 8192, %s408_s29, [#allocation15], %s3070_s18, %s3070_s18, %s3071_s19  }
  0x4f   : > { %p2869_p2 = pnand %p2868_p13, %p2862_p11 }
  0x51   : > { %2872 = shalt.err (!%p2869_p2)
}
  0x52   : > { %s3732_s5 = sld [smem:[#allocation29_spill]]  ;;  %s3074_s29 = smov [#allocation13]  }
  0x53   : > { %s394_s26 = sshll.u32 %s3074_s29, 4  ;;  %s3075_s15 = smov [#allocation16]   ;;  %s395_s26 = int_to_ptr.vmem [resolvable:$true] %s394_s26 }
  0x54   : > { %s423_s20 = sshll.u32 %s3075_s15, 4  ;;  %s2884_s2 = scalar_lea.vmem %s395_s26, 8192  ;;  %s424_s20 = int_to_ptr.vmem [resolvable:$true] %s423_s20 }
  0x55   : > { %p2885_p5 = scmp.ne.s32.totalorder %s395_s26, %s2884_s2  ;;  %p2892_p10 = scmp.lt.s32.totalorder %s395_s26, %s395_s26 }
  0x56   : > { %p2893_p11 = scmp.lt.s32.totalorder %s2884_s2, %s2884_s2 }
  0x57   : > { %p2887_p8 = pnand %p2885_p5, %p3191_p7 }
  0x58   : > { %2651 = dma.hbm_to_vmem [thread:$0]  (!%p3181_p6), %s3732_s5, 2048, %s369_s17, [#allocation9], %s3070_s18, %s3070_s18, %s3071_s19  }
  0x59   : > { %p2888_p9 = pneg %p2887_p8  ;;  %p2894_p12 = por %p2893_p11, %p2892_p10 }
  0x5b   : > { %p2895_p0 = pnand %p2894_p12, %p2888_p9 }
  0x5d   : > { %2898 = shalt.err (!%p2895_p0)
}
  0x5e   : > { %s3733_s7 = sld [smem:[#allocation31_spill]]  ;;  %s2910_s30 = scalar_lea.vmem %s424_s20, 2048 }
  0x5f   : > { %p2911_p13 = scmp.ne.s32.totalorder %s424_s20, %s2910_s30  ;;  %p2918_p8 = scmp.lt.s32.totalorder %s424_s20, %s424_s20 }
  0x60   : > { %p2919_p10 = scmp.lt.s32.totalorder %s2910_s30, %s2910_s30 }
  0x61   : > { %p2913_p2 = pnand %p2911_p13, %p3191_p7 }
  0x62   : > { %p2920_p9 = por %p2919_p10, %p2918_p8 }
  0x63   : > { %p2914_p5 = pneg %p2913_p2 }
  0x64   : > { %2657 = dma.hbm_to_vmem [thread:$0]  (!%p3181_p6), %s3733_s7, 8192, %s395_s26, [#allocation12], %s3070_s18, %s3070_s18, %s3071_s19  }
  0x65   : > { %p2921_p11 = pnand %p2920_p9, %p2914_p5 }
  0x67   : > { %2924 = shalt.err (!%p2921_p11)
}
  0x68   : > { %s3734_s10 = sld [smem:[#allocation33_spill]]  ;;  %s2142_s13 = sadd.s32 4294967294, %s3065_s24  }
  0x69   : > { %s3277_s16 = sadd.s32 1, %s3065_s24   ;;  %s41_s29 = sadd.s32 1, %s3061_s23 }
  0x6a   : > { %s38_s26 = ssub.s32 %s3065_s24, %s3277_s16  ;;  %p48_p7 = scmp.ne.s32.totalorder %s3061_s23, %s3057_s22 }
  0x6b   : > { %p39_p12 = scmp.eq.s32.totalorder %s38_s26, 0  ;;  %p49_p0 = scmp.eq.s32.totalorder %s3065_s24, 0 }
  0x6c   : > { %p54_p13 = scmp.ne.s32.totalorder %s3057_s22, %s3053_s21  ;;  %p314_p2 = scmp.eq.s32.totalorder %s3167_s27, 1 }
  0x6d   : > { %s3289_s15 = scalar_select %p39_p12, %s3061_s23, %s41_s29  }
  0x6e   : > { %2663 = dma.hbm_to_vmem [thread:$0]  (!%p3181_p6), %s3734_s10, 2048, %s424_s20, [#allocation15], %s3070_s18, %s3070_s18, %s3071_s19  }
  0x6f   : > { %3735 = sst [smem:[#allocation26_spill]] %s3289_s15  ;;  %p50_p5 = por %p49_p0, %p48_p7 }
  0x70   : > { %p3293_p8 = por %p3711_p1, %p54_p13  ;;  %p3297_p6 = por %p314_p2, %p48_p7 }
  0x71   : > { %p320_p10 = scmp.eq.s32.totalorder %s2142_s13, 1  ;;  %p2682_p9 = scmp.lt.s32.totalorder %s3065_s24, 2 }
  0x72   : > { %s3736_s17 = scalar_select %p3293_p8, 1, 0 }
  0x73   : > { %s3737_s18 = scalar_select %p3297_p6, 1, 0 }
  0x74   : > { %s440_s19 = sand.u32 1, %s3061_s23   ;;  %p3303_p11 = por %p320_p10, %p54_p13 }
  0x75   : > { %s3307_s25 = sshll.u32 %s440_s19, 3  ;;  %s2153_s30 = sshll.u32 %s3065_s24, 7 }
  0x76   : > { %s3738_s20 = scalar_select %p3303_p11, 1, 0 }
  0x77   : > { %s3313_s29 = scalar_lea.hbm %s3697_s0, %s2153_s30  ;;  %s444_s26 = scalar_lea.vmem [#allocation2], %s3307_s25 }
  0x78   : > { %s451_s13 = sshll.u32 %s444_s26, 4  ;;  %p3316_p7 = pnand %p2682_p9, %p50_p5  ;;  %s452_s13 = int_to_ptr.vmem [resolvable:$true] %s451_s13 }
  0x79   : > { %s3323_s7 = scalar_lea.hbm %s3698_s1, %s2153_s30  ;;  %s441_s2 = scalar_lea.sflag [#allocation3], %s440_s19 }
  0x7a   : > { %s2925_s14 = scalar_lea.hbm %s3313_s29, 128  ;;  %p2927_p0 = pneg %p3316_p7 }
  0x7b   : > { %p2926_p12 = scmp.ne.s32.totalorder %s3313_s29, %s2925_s14  ;;  %s2930_s10 = scalar_lea.hbm %s3697_s0, 256 }
  0x7c   : > { %p2931_p5 = scmp.lt.s32.totalorder %s3313_s29, %s3697_s0  ;;  %p2932_p10 = scmp.lt.s32.totalorder %s2930_s10, %s2925_s14 }
  0x7d   : > { %p2928_p13 = pnand %p2927_p0, %p2926_p12 }
  0x7e   : > { %p2933_p9 = por %p2932_p10, %p2931_p5 }
  0x7f   : > { %p2929_p2 = pneg %p2928_p13 }
  0x81   : > { %p2934_p4 = pnand %p2933_p9, %p2929_p2 }
  0x83   : > { %2937 = shalt.err (!%p2934_p4)
}
  0x84   : > { %s2938_s5 = scalar_lea.vmem %s452_s13, 128  ;;  %s3076_s6 = smov [#allocation2]  }
  0x85   : > { %p2939_p1 = scmp.ne.s32.totalorder %s452_s13, %s2938_s5  ;;  %s2943_s19 = sshll.u32 %s3076_s6, 4  ;;  %s2944_s19 = int_to_ptr.vmem [resolvable:$false] %s2943_s19 }
  0x86   : > { %s2945_s8 = scalar_lea.vmem %s2944_s19, 256  ;;  %p2946_p13 = scmp.lt.s32.totalorder %s452_s13, %s2944_s19 }
  0x87   : > { %p2941_p11 = pnand %p2939_p1, %p2927_p0  ;;  %p2947_p6 = scmp.lt.s32.totalorder %s2945_s8, %s2938_s5 }
  0x89   : > { %p2942_p12 = pneg %p2941_p11  ;;  %p2948_p8 = por %p2947_p6, %p2946_p13 }
  0x8b   : > { %p2949_p3 = pnand %p2948_p8, %p2942_p12 }
  0x8d   : > { %2952 = shalt.err (!%p2949_p3)
}
  0x8e   : > { %2667 = dma.hbm_to_vmem [thread:$0]  (!%p3316_p7), %s3313_s29, 128, %s452_s13, %s441_s2  }
  0x8f   : > { %s458_s10 = sand.u32 1, %s3065_s24   ;;  %s462_s23 = scalar_lea.vmem [#allocation5], %s3307_s25 }
  0x90   : > { %s469_s15 = sshll.u32 %s462_s23, 4  ;;  %s459_s30 = scalar_lea.sflag [#allocation6], %s458_s10  ;;  %s470_s15 = int_to_ptr.vmem [resolvable:$true] %s469_s15 }
  0x91   : > { %s2953_s14 = scalar_lea.hbm %s3323_s7, 128  ;;  %s2958_s6 = scalar_lea.hbm %s3698_s1, 256 }
  0x92   : > { %p2954_p1 = scmp.ne.s32.totalorder %s3323_s7, %s2953_s14  ;;  %p2959_p8 = scmp.lt.s32.totalorder %s3323_s7, %s3698_s1 }
  0x93   : > { %p2960_p6 = scmp.lt.s32.totalorder %s2958_s6, %s2953_s14 }
  0x94   : > { %p2956_p3 = pnand %p2954_p1, %p2927_p0 }
  0x95   : > { %p2961_p11 = por %p2960_p6, %p2959_p8 }
  0x96   : > { %p2957_p4 = pneg %p2956_p3 }
  0x98   : > { %p2962_p2 = pnand %p2961_p11, %p2957_p4 }
  0x9a   : > { %2965 = shalt.err (!%p2962_p2)
}
  0x9b   : > { %s2966_s25 = scalar_lea.vmem %s470_s15, 128  ;;  %s3077_s29 = smov [#allocation5]  }
  0x9c   : > { %p2967_p5 = scmp.ne.s32.totalorder %s470_s15, %s2966_s25  ;;  %s2971_s13 = sshll.u32 %s3077_s29, 4  ;;  %s2972_s13 = int_to_ptr.vmem [resolvable:$false] %s2971_s13 }
  0x9d   : > { %s2973_s2 = scalar_lea.vmem %s2972_s13, 256  ;;  %p2974_p12 = scmp.lt.s32.totalorder %s470_s15, %s2972_s13 }
  0x9e   : > { %p2969_p10 = pnand %p2967_p5, %p2927_p0  ;;  %p2975_p13 = scmp.lt.s32.totalorder %s2973_s2, %s2966_s25 }
  0xa0   : > { %p2970_p9 = pneg %p2969_p10  ;;  %p2976_p1 = por %p2975_p13, %p2974_p12 }
  0xa2   : > { %p2977_p3 = pnand %p2976_p1, %p2970_p9 }
  0xa4   : > { %2980 = shalt.err (!%p2977_p3)
}
  0xa5   : > { %2670 = dma.hbm_to_vmem [thread:$0]  (!%p3316_p7), %s3323_s7, 128, %s470_s15, %s459_s30  }
  0xa6   : > { %p3740_p4 = scmp.ne.s32.totalorder %s3725_s28, 0 }
  0xa7   : > { %s3368_s10 = sand.u32 (!%p3740_p4), 1, %s3057_s22   ;;  %p3741_p0 = scmp.ne.s32.totalorder (!%p3740_p4), %s3736_s17, 0 }
  0xa8   : > { %478 = sbr.rel (%p3740_p4) target bundleno = 1126 (0x466), region = 68  ;;  %s3371_s23 = sshll.u32 (!%p3740_p4), %s3368_s10, 3 }
  0xa9   : > { %s481_s14 = scalar_lea.sflag (!%p3740_p4), [#allocation3], %s3368_s10  ;;  %s484_s26 = scalar_lea.vmem (!%p3740_p4), [#allocation2], %s3371_s23 }
  0xad   : > { %3024 = dma.done.wait (%p3741_p0), %s481_s14, 128  }
  0xae   : > { %3026 = vsyncadd (%p3741_p0), %s481_s14, 4294967168  ;;  %s489_s3 = sand.u32 1, %s3167_s27   ;;  %s493_s28 = scalar_lea.vmem [#allocation5], %s3371_s23 }
  0xaf   : > { %s490_s7 = scalar_lea.sflag [#allocation6], %s489_s3 }
  0xb0   : > { %3028 = dma.done.wait (%p3741_p0), %s490_s7, 128  }
  0xb1   : > { %3030 = vsyncadd (%p3741_p0), %s490_s7, 4294967168  ;;  %p3742_p7 = scmp.eq.s32.totalorder %s3167_s27, 0 }
  0xb3   : > { %3032 = dma.done.wait (%p3742_p7), [#allocation6], 2048   ;;  %p3743_p8 = pmov %p3742_p7 }
  0xb4   : > { %p3744_p6 = pmov %p3742_p7 }
  0xb5   : > { %3034 = vsyncadd (%p3743_p8), [#allocation6], 4294965248 }
  0xb6   : > { %3036 = dma.done.wait (%p3744_p6), [#allocation9], 4096   ;;  %p3745_p11 = pmov %p3744_p6 }
  0xb7   : > { %p3746_p2 = pmov %p3744_p6 }
  0xb8   : > { %3038 = vsyncadd (%p3745_p11), [#allocation9], 4294963200 }
  0xb9   : > { %3040 = dma.done.wait (%p3746_p2), [#allocation12], 16384   ;;  %p3747_p5 = pmov %p3746_p2 }
  0xba   : > { %p3748_p10 = pmov %p3746_p2 }
  0xbb   : > { %3042 = vsyncadd (%p3747_p5), [#allocation12], 4294950912 }
  0xbc   : > { %3044 = dma.done.wait (%p3748_p10), [#allocation15], 10240   ;;  %p3749_p9 = pmov %p3746_p2 }
  0xbd   : > { %v3078_v0 = vmov 0.0   ;;  %vm3715_vm0 = vmmov 0   ;;  %v600_v1 = vld [vmem:[#allocation8 + $0x78] sm:$0xff]  ;;  %v599_v2 = vld [vmem:[#allocation8 + $0x70] sm:$0xff]  ;;  %v598_v3 = vld [vmem:[#allocation8 + $0x68] sm:$0xff]  ;;  %v918_v21 = vlaneseq  ;;  %vm748_vm1 = vcmask 64512  }
  0xbe   : > { %3046 = vsyncadd (%p3749_p9), [#allocation15], 4294957056  ;;  %2458 = vmatprep.subr.mxu0 %v3078_v0  ;;  %2493 = vmatprep.subr.mxu1 %v3078_v0  ;;  %v584_v4 = vld [vmem:[#allocation7 + $0x78] sm:$0xff]  ;;  %v597_v5 = vld [vmem:[#allocation8 + $0x60] sm:$0xff]  ;;  %vm1120_vm10 = vcmask 1041409   ;;  %vm1122_vm11 = vcmask 1042434  }
  0xbf   : > { %2490 = vmatprep.mubr.msk.f32.mxu0 %vm3715_vm0, %v3078_v0  ;;  %2525 = vmatprep.mubr.msk.f32.mxu1 %vm3715_vm0, %v3078_v0  ;;  %v583_v6 = vld [vmem:[#allocation7 + $0x70] sm:$0xff]  ;;  %v582_v7 = vld [vmem:[#allocation7 + $0x68] sm:$0xff]  ;;  %v596_v8 = vld [vmem:[#allocation8 + $0x58] sm:$0xff]  ;;  %v3427_v26 = vshrl.u32 %v918_v21, 7  ;;  %vm1124_vm12 = vcmask 1043459   ;;  %vm1126_vm13 = vcmask 1044484  }
  0xc0   : > { %2459 = vmatpush3.msra.mxu0 %v600_v1  ;;  %2494 = vmatpush3.msra.mxu1 %v584_v4  ;;  %v581_v9 = vld [vmem:[#allocation7 + $0x60] sm:$0xff]  ;;  %v595_v10 = vld [vmem:[#allocation8 + $0x50] sm:$0xff]  ;;  %v580_v11 = vld [vmem:[#allocation7 + $0x58] sm:$0xff]  ;;  %vm1128_vm14 = vcmask 1045509   ;;  %vm1130_vm15 = vcmask 1046534   ;;  %s2173_s8 = sshll.u32 %s3167_s27, 7 }
  0xc1   : > { %2460 = vmatprep.subr.mxu0 %v3078_v0  ;;  %2495 = vmatprep.subr.mxu1 %v3078_v0  ;;  %v594_v12 = vld [vmem:[#allocation8 + $0x48] sm:$0xff]  ;;  %v579_v13 = vld [vmem:[#allocation7 + $0x50] sm:$0xff]  ;;  %v593_v14 = vld [vmem:[#allocation8 + $0x40] sm:$0xff]  ;;  %v927_v31 = vsub.s32 1, %v3427_v26  ;;  %v934_v39 = vsub.s32 2, %v3427_v26  ;;  %v941_v42 = vsub.s32 3, %v3427_v26  ;;  %s3660_s14 = scalar_lea.hbm %s3709_s12, %s2173_s8 }
  0xc2   : > { %2461 = vmatpush3.msra.mxu0 %v599_v2  ;;  %2496 = vmatpush3.msra.mxu1 %v583_v6  ;;  %v578_v15 = vld [vmem:[#allocation7 + $0x48] sm:$0xff]  ;;  %v592_v16 = vld [vmem:[#allocation8 + $0x38] sm:$0xff]  ;;  %v577_v17 = vld [vmem:[#allocation7 + $0x40] sm:$0xff]  ;;  %v948_v44 = vsub.s32 4, %v3427_v26  ;;  %v955_v46 = vsub.s32 5, %v3427_v26  ;;  %v962_v48 = vsub.s32 6, %v3427_v26 }
  0xc3   : > { %2462 = vmatprep.subr.mxu0 %v3078_v0  ;;  %2497 = vmatprep.subr.mxu1 %v3078_v0  ;;  %v591_v18 = vld [vmem:[#allocation8 + $0x30] sm:$0xff]  ;;  %v576_v19 = vld [vmem:[#allocation7 + $0x38] sm:$0xff]  ;;  %v590_v20 = vld [vmem:[#allocation8 + $0x28] sm:$0xff]  ;;  %v920_v49 = vsub.s32 0, %v3427_v26  ;;  %v969_v51 = vsub.s32 7, %v3427_v26  ;;  %s566_s25 = scalar_lea.vmem [#allocation17], %s3371_s23 }
  0xc4   : > { %2463 = vmatpush3.msra.mxu0 %v598_v3  ;;  %2498 = vmatpush3.msra.mxu1 %v582_v7  ;;  %v575_v22 = vld [vmem:[#allocation7 + $0x30] sm:$0xff]  ;;  %v589_v23 = vld [vmem:[#allocation8 + $0x20] sm:$0xff]  ;;  %v574_v24 = vld [vmem:[#allocation7 + $0x28] sm:$0xff]  ;;  %s1983_s29 = sshll.u32 %s566_s25, 4  ;;  %p3751_p13 = scmp.ne.s32.totalorder %s3737_s18, 0  ;;  %s1984_s29 = int_to_ptr.vmem [resolvable:$true] %s1983_s29 }
  0xc5   : > { %2464 = vmatprep.subr.mxu0 %v3078_v0  ;;  %2499 = vmatprep.subr.mxu1 %v3078_v0  ;;  %v588_v25 = vld [vmem:[#allocation8 + $0x18] sm:$0xff]  ;;  %v573_v27 = vld [vmem:[#allocation7 + $0x20] sm:$0xff]  ;;  %v587_v28 = vld [vmem:[#allocation8 + $0x10] sm:$0xff]  ;;  %s2981_s3 = scalar_lea.vmem %s1984_s29, 128  ;;  %s3080_s27 = smov [#allocation17]  }
  0xc6   : > { %2465 = vmatpush3.msra.mxu0 %v597_v5  ;;  %2500 = vmatpush3.msra.mxu1 %v581_v9  ;;  %v572_v29 = vld [vmem:[#allocation7 + $0x18] sm:$0xff]  ;;  %v586_v30 = vld [vmem:[#allocation8 + $0x8] sm:$0xff]  ;;  %v571_v32 = vld [vmem:[#allocation7 + $0x10] sm:$0xff]  ;;  %p2982_p12 = scmp.ne.s32.totalorder %s1984_s29, %s2981_s3  ;;  %s2985_s23 = sshll.u32 %s3080_s27, 4  ;;  %s2986_s23 = int_to_ptr.vmem [resolvable:$false] %s2985_s23 }
  0xc7   : > { %2466 = vmatprep.subr.mxu0 %v3078_v0  ;;  %2501 = vmatprep.subr.mxu1 %v3078_v0  ;;  %v3437_v33 = vld [vmem:[%s493_s28] sm:$0xff]  ;;  %v585_v34 = vld [vmem:[#allocation8] sm:$0xff]  ;;  %v570_v36 = vld [vmem:[#allocation7 + $0x8] sm:$0xff]  ;;  %s2987_s7 = scalar_lea.vmem %s2986_s23, 256  ;;  %p2988_p4 = scmp.lt.s32.totalorder %s1984_s29, %s2986_s23 }
  0xc8   : > { %2467 = vmatpush3.msra.mxu0 %v596_v8  ;;  %2502 = vmatpush3.msra.mxu1 %v580_v11  ;;  %v567_v35 = vld [vmem:[%s484_s26] sm:$0xff]  ;;  %v749_v37 = vsel %vm748_vm1, %v3437_v33, 0.0  ;;  %v928_v38 = vrot.slane %v3437_v33, %v927_v31  ;;  %v935_v41 = vrot.slane %v3437_v33, %v934_v39  ;;  %v942_v43 = vrot.slane %v3437_v33, %v941_v42  ;;  %v1209_v63 = vld [vmem:[#allocation11 + $0xf8] sm:$0xff]  ;;  %v1208_v8 = vld [vmem:[#allocation11 + $0xf0] sm:$0xff]  ;;  %p2983_p1 = pnand %p2982_p12, %p3751_p13  ;;  %p2989_p0 = scmp.lt.s32.totalorder %s2987_s7, %s2981_s3 }
  0xc9   : > { %2468 = vmatprep.subr.mxu0 %v3078_v0  ;;  %2503 = vmatprep.subr.mxu1 %v3078_v0  ;;  %v569_v40 = vld [vmem:[#allocation7] sm:$0xff]  ;;  %v949_v45 = vrot.slane %v3437_v33, %v948_v44  ;;  %v956_v47 = vrot.slane %v3437_v33, %v955_v46  ;;  %v963_v50 = vrot.slane %v3437_v33, %v962_v48  ;;  %v1193_v2 = vld [vmem:[#allocation11 + $0x78] sm:$0xff] }
  0xca   : > { %2469 = vmatpush3.msra.mxu0 %v595_v10  ;;  %2504 = vmatpush3.msra.mxu1 %v579_v13  ;;  %v921_v52 = vrot.slane %v3437_v33, %v920_v49  ;;  %v970_v53 = vrot.slane %v3437_v33, %v969_v51  ;;  %v2167_v4 = vld [vmem:[%s3701_s4] ss:$0 sm:$0xff]  ;;  %v1189_v46 = vld [vmem:[#allocation11 + $0x58] sm:$0xff]  ;;  %v1204_v51 = vld [vmem:[#allocation11 + $0xd0] sm:$0xff]  ;;  %p2984_p3 = pneg %p2983_p1  ;;  %p2990_p7 = por %p2989_p0, %p2988_p4 }
  0xcb   : > { %2470 = vmatprep.subr.mxu0 %v3078_v0  ;;  %2505 = vmatprep.subr.mxu1 %v3078_v0 }
  0xcc   : > { %2471 = vmatpush3.msra.mxu0 %v594_v12  ;;  %2506 = vmatpush3.msra.mxu1 %v578_v15  ;;  %p2991_p8 = pnand %p2990_p7, %p2984_p3 }
  0xcd   : > { %2472 = vmatprep.subr.mxu0 %v3078_v0  ;;  %2507 = vmatprep.subr.mxu1 %v3078_v0 }
  0xce   : > { %2473 = vmatpush3.msra.mxu0 %v593_v14  ;;  %2508 = vmatpush3.msra.mxu1 %v577_v17  ;;  %v1192_v14 = vld [vmem:[#allocation11 + $0x70] sm:$0xff] }
  0xcf   : > { %2474 = vmatprep.subr.mxu0 %v3078_v0  ;;  %2509 = vmatprep.subr.mxu1 %v3078_v0 }
  0xd0   : > { %2475 = vmatpush3.msra.mxu0 %v592_v16  ;;  %2510 = vmatpush3.msra.mxu1 %v576_v19 }
  0xd1   : > { %2476 = vmatprep.subr.mxu0 %v3078_v0  ;;  %2511 = vmatprep.subr.mxu1 %v3078_v0 }
  0xd2   : > { %2477 = vmatpush3.msra.mxu0 %v591_v18  ;;  %2512 = vmatpush3.msra.mxu1 %v575_v22 }
  0xd3   : > { %2478 = vmatprep.subr.mxu0 %v3078_v0  ;;  %2513 = vmatprep.subr.mxu1 %v3078_v0 }
  0xd4   : > { %2479 = vmatpush3.msra.mxu0 %v590_v20  ;;  %2514 = vmatpush3.msra.mxu1 %v574_v24  ;;  %v1207_v20 = vld [vmem:[#allocation11 + $0xe8] sm:$0xff] }
  0xd5   : > { %2480 = vmatprep.subr.mxu0 %v3078_v0  ;;  %2515 = vmatprep.subr.mxu1 %v3078_v0 }
  0xd6   : > { %2481 = vmatpush3.msra.mxu0 %v589_v23  ;;  %2516 = vmatpush3.msra.mxu1 %v573_v27 }
  0xd7   : > { %2482 = vmatprep.subr.mxu0 %v3078_v0  ;;  %2517 = vmatprep.subr.mxu1 %v3078_v0 }
  0xd8   : > { %2483 = vmatpush3.msra.mxu0 %v588_v25  ;;  %2518 = vmatpush3.msra.mxu1 %v572_v29  ;;  %v1191_v25 = vld [vmem:[#allocation11 + $0x68] sm:$0xff] }
  0xd9   : > { %2484 = vmatprep.subr.mxu0 %v3078_v0  ;;  %2519 = vmatprep.subr.mxu1 %v3078_v0 }
  0xda   : > { %2485 = vmatpush3.msra.mxu0 %v587_v28  ;;  %2520 = vmatpush3.msra.mxu1 %v571_v32 }
  0xdb   : > { %2486 = vmatprep.subr.mxu0 %v3078_v0  ;;  %2521 = vmatprep.subr.mxu1 %v3078_v0 }
  0xdc   : > { %2487 = vmatpush3.msra.mxu0 %v586_v30  ;;  %2522 = vmatpush3.msra.mxu1 %v570_v36  ;;  %v1206_v30 = vld [vmem:[#allocation11 + $0xe0] sm:$0xff] }
  0xdd   : > { %2488 = vmatprep.subr.mxu0 %v3078_v0  ;;  %2523 = vmatprep.subr.mxu1 %v3078_v0  ;;  %v1190_v36 = vld [vmem:[#allocation11 + $0x60] sm:$0xff] }
  0xde   : > { %2489 = vmatpush3.msra.mxu0 %v585_v34  ;;  %750 = vadd.xlane.f32.xlu0 %v749_v37 }
  0xdf   : > { %2491 = vmatmul.mubr.f32.vlgmr.msra.gmra.mxu0 %v567_v35  ;;  %2524 = vmatpush3.msra.mxu1 %v569_v40 }
  0xe0   : > { %930 = vbcast.lane.b32.xlu1 %v928_v38, 256  ;;  %2526 = vmatmul.mubr.f32.vlgmr.msra.gmra.mxu1 %v567_v35 }
  0xe1   : > { %2528 = vmatprep.subr.mxu0 %v3078_v0  ;;  %2530 = vmatprep.mubr.msk.f32.mxu0 %vm3715_vm0, %v3078_v0 }
  0xe2   : > { %2533 = vmatprep.subr.mxu1 %v3078_v0  ;;  %2535 = vmatprep.mubr.msk.f32.mxu1 %vm3715_vm0, %v3078_v0 }
  0xe4   : > { %937 = vbcast.lane.b32.xlu1 %v935_v41, 256  ;;  %v1205_v41 = vld [vmem:[#allocation11 + $0xd8] sm:$0xff] }
  0xe8   : > { %944 = vbcast.lane.b32.xlu1 %v942_v43, 256 }
  0xec   : > { %951 = vbcast.lane.b32.xlu1 %v949_v45, 256 }
  0xf0   : > { %958 = vbcast.lane.b32.xlu1 %v956_v47, 256 }
  0xf4   : > { %965 = vbcast.lane.b32.xlu1 %v963_v50, 256  ;;  %923 = vbcast.lane.b32.xlu0 %v921_v52, 256 }
  0xf8   : > { %972 = vbcast.lane.b32.xlu1 %v970_v53, 256 }
 0x152   : > { %v3469_v54 = vpop.permute.xlu1 %930 }
 0x153   : > { %vm975_vm2 = vcmp.gt.f32.partialorder %v3469_v54, 0.0 }
 0x156   : > { %v3471_v55 = vpop.permute.xlu1 %937 }
 0x157   : > { %vm976_vm3 = vcmp.gt.f32.partialorder %v3471_v55, 0.0 }
 0x15a   : > { %v3473_v56 = vpop.permute.xlu1 %944 }
 0x15b   : > { %vm977_vm5 = vcmp.gt.f32.partialorder %v3473_v56, 0.0  ;;  %v1184_v56 = vld [vmem:[#allocation11 + $0x30] sm:$0xff] }
 0x15e   : > { %v3475_v57 = vpop.permute.xlu1 %951 }
 0x15f   : > { %vm978_vm6 = vcmp.gt.f32.partialorder %v3475_v57, 0.0 }
 0x162   : > { %v3477_v58 = vpop.permute.xlu1 %958 }
 0x163   : > { %vm979_vm7 = vcmp.gt.f32.partialorder %v3477_v58, 0.0 }
 0x166   : > { %v3481_v60 = vpop.permute.xlu1 %965 }
 0x167   : > { %v3479_v59 = vpop.xlane.xlu0 %750  ;;  %vm980_vm8 = vcmp.gt.f32.partialorder %v3481_v60, 0.0 }
 0x168   : > { %vm752_vm0 = vcmp.gt.f32.partialorder %v3479_v59, 0.0 }
 0x16a   : > { %v3485_v62 = vpop.permute.xlu1 %972 }
 0x16b   : > { %v3483_v61 = vpop.permute.xlu0 %923  ;;  %vm981_vm9 = vcmp.gt.f32.partialorder %v3485_v62, 0.0  ;;  %v1198_v62 = vld [vmem:[#allocation11 + $0xa0] sm:$0xff] }
 0x16c   : > { %vm974_vm4 = vcmp.gt.f32.partialorder %v3483_v61, 0.0 }
 0x19f   : > { %v3495_v1 = vpop.f32.mrf.mxu0 }
 0x1a0   : > { %2529 = vmatpush3.msra.mxu0 %v3495_v1  ;;  %v828_v3 = vmul.f32 %v3495_v1, %v3495_v1  ;;  %v998_v5 = vsel %vm974_vm4, %v3495_v1, -inf  ;;  %v999_v6 = vsel %vm975_vm2, %v3495_v1, -inf  ;;  %v1000_v7 = vsel %vm976_vm3, %v3495_v1, -inf  ;;  %v744_v15 = vpop.f32.mrf.mxu1 }
 0x1a1   : > { %v2492_v9 = vpop.f32.mrf.mxu0  ;;  %2531 = vmatmul.mubr.msk.f32.vlgmr.msra.gmra.mxu0 %vm748_vm1, %v3437_v33  ;;  %v1001_v10 = vsel %vm977_vm5, %v3495_v1, -inf  ;;  %v1002_v11 = vsel %vm978_vm6, %v3495_v1, -inf  ;;  %v1003_v12 = vsel %vm979_vm7, %v3495_v1, -inf  ;;  %v1004_v13 = vsel %vm980_vm8, %v3495_v1, -inf  ;;  %2214 = vmatprep.subr.mxu0 %v1209_v63 }
 0x1a2   : > { %2534 = vmatpush3.msra.mxu1 %v828_v3  ;;  %v1005_v16 = vsel %vm981_vm9, %v3495_v1, -inf  ;;  %v1006_v17 = vrot.slane %v998_v5, 4  ;;  %v1012_v18 = vrot.slane %v999_v6, 4  ;;  %v1018_v19 = vrot.slane %v1000_v7, 4  ;;  %2215 = vmatpush3.msra.mxu0 %v1193_v2  ;;  %v2527_v31 = vpop.f32.mrf.mxu1  ;;  %v1188_v3 = vld [vmem:[#allocation11 + $0x50] sm:$0xff] }
 0x1a3   : > { %2536 = vmatmul.mubr.msk.f32.vlgmr.msra.gmra.mxu1 %vm748_vm1, %v3437_v33  ;;  %v3531_v21 = vadd.f32 %v2167_v4, %v744_v15  ;;  %v1024_v22 = vrot.slane %v1001_v10, 4  ;;  %v1030_v23 = vrot.slane %v1002_v11, 4  ;;  %v1036_v24 = vrot.slane %v1003_v12, 4  ;;  %2216 = vmatprep.subr.mxu0 %v1208_v8  ;;  %v1203_v8 = vld [vmem:[#allocation11 + $0xc8] sm:$0xff] }
 0x1a4   : > { %v1007_v26 = vmax.f32 %v998_v5, %v1006_v17  ;;  %v1013_v27 = vmax.f32 %v999_v6, %v1012_v18  ;;  %v1019_v28 = vmax.f32 %v1000_v7, %v1018_v19  ;;  %v1042_v29 = vrot.slane %v1004_v13, 4  ;;  %2217 = vmatpush3.msra.mxu0 %v1192_v14  ;;  %v1202_v18 = vld [vmem:[#allocation11 + $0xc0] sm:$0xff] }
 0x1a5   : > { %v1025_v32 = vmax.f32 %v1001_v10, %v1024_v22  ;;  %v1031_v34 = vmax.f32 %v1002_v11, %v1030_v23  ;;  %v1037_v35 = vmax.f32 %v1003_v12, %v1036_v24  ;;  %v1048_v33 = vrot.slane %v1005_v16, 4  ;;  %2218 = vmatprep.subr.mxu0 %v1207_v20  ;;  %v1186_v24 = vld [vmem:[#allocation11 + $0x40] sm:$0xff] }
 0x1a6   : > { %v1008_v37 = vrot.slane %v1007_v26, 2  ;;  %v1014_v38 = vrot.slane %v1013_v27, 2  ;;  %v1020_v39 = vrot.slane %v1019_v28, 2  ;;  %v1043_v40 = vmax.f32 %v1004_v13, %v1042_v29  ;;  %2219 = vmatpush3.msra.mxu0 %v1191_v25  ;;  %v1187_v13 = vld [vmem:[#allocation11 + $0x48] sm:$0xff] }
 0x1a7   : > { %v1026_v42 = vrot.slane %v1025_v32, 2  ;;  %v1032_v43 = vrot.slane %v1031_v34, 2  ;;  %v1038_v44 = vrot.slane %v1037_v35, 2  ;;  %v1049_v45 = vmax.f32 %v1005_v16, %v1048_v33  ;;  %2220 = vmatprep.subr.mxu0 %v1206_v30  ;;  %v1200_v33 = vld [vmem:[#allocation11 + $0xb0] sm:$0xff] }
 0x1a8   : > { %v1009_v47 = vmax.f32 %v1007_v26, %v1008_v37  ;;  %v1015_v48 = vmax.f32 %v1013_v27, %v1014_v38  ;;  %v1021_v49 = vmax.f32 %v1019_v28, %v1020_v39  ;;  %v1044_v50 = vrot.slane %v1043_v40, 2  ;;  %2221 = vmatpush3.msra.mxu0 %v1190_v36  ;;  %v1201_v27 = vld [vmem:[#allocation11 + $0xb8] sm:$0xff] }
 0x1a9   : > { %v1027_v52 = vmax.f32 %v1025_v32, %v1026_v42  ;;  %v1033_v53 = vmax.f32 %v1031_v34, %v1032_v43  ;;  %v1039_v63 = vmax.f32 %v1037_v35, %v1038_v44  ;;  %v1050_v2 = vrot.slane %v1049_v45, 2  ;;  %2222 = vmatprep.subr.mxu0 %v1205_v41  ;;  %v1185_v32 = vld [vmem:[#allocation11 + $0x38] sm:$0xff]  ;;  %v1199_v41 = vld [vmem:[#allocation11 + $0xa8] sm:$0xff] }
 0x1aa   : > { %vm1132_vm1 = vcmask 1047559   ;;  %v1010_v4 = vrot.slane %v1009_v47, 1  ;;  %v1016_v5 = vrot.slane %v1015_v48, 1  ;;  %v1022_v6 = vrot.slane %v1021_v49, 1  ;;  %2223 = vmatpush3.msra.mxu0 %v1189_v46  ;;  %v1183_v44 = vld [vmem:[#allocation11 + $0x28] sm:$0xff] }
 0x1ab   : > { %v1045_v7 = vmax.f32 %v1043_v40, %v1044_v50  ;;  %v1028_v9 = vrot.slane %v1027_v52, 1  ;;  %v1034_v10 = vrot.slane %v1033_v53, 1  ;;  %v1040_v11 = vrot.slane %v1039_v63, 1  ;;  %2224 = vmatprep.subr.mxu0 %v1204_v51 }
 0x1ac   : > { %v1051_v12 = vmax.f32 %v1049_v45, %v1050_v2  ;;  %v1011_v14 = vmax.f32 %v1009_v47, %v1010_v4  ;;  %v1017_v15 = vmax.f32 %v1015_v48, %v1016_v5  ;;  %v1023_v16 = vmax.f32 %v1021_v49, %v1022_v6  ;;  %2225 = vmatpush3.msra.mxu0 %v1188_v3  ;;  %v1197_v4 = vld [vmem:[#allocation11 + $0x98] sm:$0xff] }
 0x1ad   : > { %v1046_v17 = vrot.slane %v1045_v7, 1  ;;  %v1029_v19 = vmax.f32 %v1027_v52, %v1028_v9  ;;  %v1035_v20 = vmax.f32 %v1033_v53, %v1034_v10  ;;  %v1041_v22 = vmax.f32 %v1039_v63, %v1040_v11  ;;  %2226 = vmatprep.subr.mxu0 %v1203_v8  ;;  %v1182_v52 = vld [vmem:[#allocation11 + $0x20] sm:$0xff]  ;;  %v1181_v8 = vld [vmem:[#allocation11 + $0x18] sm:$0xff] }
 0x1ae   : > { %v1052_v23 = vrot.slane %v1051_v12, 1  ;;  %v1121_v26 = vsel %vm1120_vm10, %v1017_v15, %v1011_v14  ;;  %2227 = vmatpush3.msra.mxu0 %v1187_v13  ;;  %v1054_v28 = vsel %vm974_vm4, %v3495_v1, inf  ;;  %v1055_v29 = vsel %vm975_vm2, %v3495_v1, inf  ;;  %v1196_v13 = vld [vmem:[#allocation11 + $0x90] sm:$0xff] }
 0x1af   : > { %v1047_v25 = vmax.f32 %v1045_v7, %v1046_v17  ;;  %v1123_v31 = vsel %vm1122_vm11, %v1023_v16, %v1121_v26  ;;  %2228 = vmatprep.subr.mxu0 %v1202_v18  ;;  %v1056_v34 = vsel %vm976_vm3, %v3495_v1, inf  ;;  %v1057_v35 = vsel %vm977_vm5, %v3495_v1, inf  ;;  %v1180_v18 = vld [vmem:[#allocation11 + $0x10] sm:$0xff] }
 0x1b0   : > { %v1053_v30 = vmax.f32 %v1051_v12, %v1052_v23  ;;  %v1125_v61 = vsel %vm1124_vm12, %v1029_v19, %v1123_v31  ;;  %2229 = vmatpush3.msra.mxu0 %v1186_v24  ;;  %v1058_v54 = vsel %vm978_vm6, %v3495_v1, inf  ;;  %v1059_v36 = vsel %vm979_vm7, %v3495_v1, inf }
 0x1b1   : > { %v1060_v55 = vsel %vm980_vm8, %v3495_v1, inf  ;;  %v1127_v37 = vsel %vm1126_vm13, %v1035_v20, %v1125_v61  ;;  %2230 = vmatprep.subr.mxu0 %v1201_v27  ;;  %v1061_v38 = vsel %vm981_vm9, %v3495_v1, inf  ;;  %v1062_v39 = vrot.slane %v1054_v28, 4 }
 0x1b2   : > { %v1068_v40 = vrot.slane %v1055_v29, 4  ;;  %v1129_v57 = vsel %vm1128_vm14, %v1041_v22, %v1127_v37  ;;  %2231 = vmatpush3.msra.mxu0 %v1185_v32  ;;  %v1074_v58 = vrot.slane %v1056_v34, 4  ;;  %v1080_v42 = vrot.slane %v1057_v35, 4 }
 0x1b3   : > { %v1086_v43 = vrot.slane %v1058_v54, 4  ;;  %v1131_v60 = vsel %vm1130_vm15, %v1047_v25, %v1129_v57  ;;  %2232 = vmatprep.subr.mxu0 %v1200_v33  ;;  %v1063_v45 = vmin.f32 %v1054_v28, %v1062_v39  ;;  %v1092_v47 = vrot.slane %v1059_v36, 4 }
 0x1b4   : > { %v1069_v46 = vmin.f32 %v1055_v29, %v1068_v40  ;;  %v1133_v48 = vsel %vm1132_vm1, %v1053_v30, %v1131_v60  ;;  %2233 = vmatpush3.msra.mxu0 %v1184_v56  ;;  %v1075_v1 = vmin.f32 %v1056_v34, %v1074_v58  ;;  %v1081_v49 = vmin.f32 %v1057_v35, %v1080_v42  ;;  %v1195_v60 = vld [vmem:[#allocation11 + $0x88] sm:$0xff] }
 0x1b5   : > { %v1087_v50 = vmin.f32 %v1058_v54, %v1086_v43  ;;  %v1135_v51 = vsel %vm752_vm0, %v1133_v48, 0.0  ;;  %2234 = vmatprep.subr.mxu0 %v1199_v41  ;;  %v1064_v53 = vrot.slane %v1063_v45, 2  ;;  %v1093_v2 = vmin.f32 %v1059_v36, %v1092_v47  ;;  %v1225_v47 = vld [vmem:[#allocation11 + $0x178] sm:$0xff]  ;;  %v1178_v48 = vld [vmem:[#allocation11] sm:$0xff] }
 0x1b6   : > { %v1070_v63 = vrot.slane %v1069_v46, 2  ;;  %v3568_v3 = vadd.f32 %v1135_v51, %v3531_v21  ;;  %2235 = vmatpush3.msra.mxu0 %v1183_v44  ;;  %v1076_v5 = vrot.slane %v1075_v1, 2  ;;  %v1082_v6 = vrot.slane %v1081_v49, 2  ;;  %v1179_v44 = vld [vmem:[#allocation11 + $0x8] sm:$0xff] }
 0x1b7   : > { %v1088_v7 = vrot.slane %v1087_v50, 2  ;;  %2236 = vmatprep.subr.mxu0 %v1198_v62  ;;  %v1065_v9 = vmin.f32 %v1063_v45, %v1064_v53  ;;  %v1094_v11 = vrot.slane %v1093_v2, 2  ;;  %v1098_v12 = vrot.slane %v1060_v55, 4  ;;  %v1241_v45 = vld [vmem:[#allocation11 + $0x1f8] sm:$0xff]  ;;  %v1240_v62 = vld [vmem:[#allocation11 + $0x1f0] sm:$0xff]  ;;  %v1223_v51 = vld [vmem:[#allocation11 + $0x168] sm:$0xff] }
 0x1b8   : > { %v1071_v10 = vmin.f32 %v1069_v46, %v1070_v63  ;;  %1306 = vmatprep.mubr.f32.mxu0 %v3568_v3  ;;  %2237 = vmatpush3.msra.mxu0 %v1182_v52  ;;  %v1077_v14 = vmin.f32 %v1075_v1, %v1076_v5  ;;  %v1083_v15 = vmin.f32 %v1081_v49, %v1082_v6  ;;  %v1104_v17 = vrot.slane %v1061_v38, 4  ;;  %v1194_v46 = vld [vmem:[#allocation11 + $0x80] sm:$0xff]  ;;  %v1224_v1 = vld [vmem:[#allocation11 + $0x170] sm:$0xff]  ;;  %v1413_v49 = vld [vmem:[#allocation13 + $0xf8] sm:$0xff] }
 0x1b9   : > { %v1089_v16 = vmin.f32 %v1087_v50, %v1088_v7  ;;  %2238 = vmatprep.subr.mxu0 %v1197_v4  ;;  %v1066_v19 = vrot.slane %v1065_v9, 1  ;;  %v1095_v22 = vmin.f32 %v1093_v2, %v1094_v11  ;;  %v1099_v23 = vmin.f32 %v1060_v55, %v1098_v12  ;;  %2249 = vmatprep.subr.mxu1 %v1241_v45  ;;  %v1239_v50 = vld [vmem:[#allocation11 + $0x1e8] sm:$0xff]  ;;  %v1238_v52 = vld [vmem:[#allocation11 + $0x1e0] sm:$0xff]  ;;  %v1237_v63 = vld [vmem:[#allocation11 + $0x1d8] sm:$0xff] }
 0x1ba   : > { %v1072_v20 = vrot.slane %v1071_v10, 1  ;;  %2239 = vmatpush3.msra.mxu0 %v1181_v8  ;;  %v1078_v24 = vrot.slane %v1077_v14, 1  ;;  %v1084_v25 = vrot.slane %v1083_v15, 1  ;;  %v1105_v27 = vmin.f32 %v1061_v38, %v1104_v17  ;;  %2250 = vmatpush3.msra.mxu1 %v1225_v47  ;;  %v1222_v53 = vld [vmem:[#allocation11 + $0x160] sm:$0xff]  ;;  %v1221_v2 = vld [vmem:[#allocation11 + $0x158] sm:$0xff]  ;;  %v1236_v4 = vld [vmem:[#allocation11 + $0x1d0] sm:$0xff] }
 0x1bb   : > { %v1090_v26 = vrot.slane %v1089_v16, 1  ;;  %2240 = vmatprep.subr.mxu0 %v1196_v13  ;;  %v1067_v28 = vmin.f32 %v1065_v9, %v1066_v19  ;;  %v1096_v30 = vrot.slane %v1095_v22, 1  ;;  %v1100_v31 = vrot.slane %v1099_v23, 2  ;;  %2251 = vmatprep.subr.mxu1 %v1240_v62  ;;  %v1220_v5 = vld [vmem:[#allocation11 + $0x150] sm:$0xff]  ;;  %v1235_v6 = vld [vmem:[#allocation11 + $0x1c8] sm:$0xff]  ;;  %v1234_v8 = vld [vmem:[#allocation11 + $0x1c0] sm:$0xff] }
 0x1bc   : > { %v1073_v29 = vmin.f32 %v1071_v10, %v1072_v20  ;;  %2241 = vmatpush3.msra.mxu0 %v1180_v18  ;;  %v1079_v32 = vmin.f32 %v1077_v14, %v1078_v24  ;;  %v1106_v34 = vrot.slane %v1105_v27, 2  ;;  %v1085_v35 = vmin.f32 %v1083_v15, %v1084_v25  ;;  %2252 = vmatpush3.msra.mxu1 %v1224_v1  ;;  %v1219_v7 = vld [vmem:[#allocation11 + $0x148] sm:$0xff]  ;;  %v1218_v9 = vld [vmem:[#allocation11 + $0x140] sm:$0xff]  ;;  %v1233_v10 = vld [vmem:[#allocation11 + $0x1b8] sm:$0xff] }
 0x1bd   : > { %v1101_v61 = vmin.f32 %v1099_v23, %v1100_v31  ;;  %v1091_v54 = vmin.f32 %v1089_v16, %v1090_v26  ;;  %v1097_v37 = vmin.f32 %v1095_v22, %v1096_v30  ;;  %2242 = vmatprep.subr.mxu0 %v1195_v60  ;;  %2253 = vmatprep.subr.mxu1 %v1239_v50  ;;  %v1217_v11 = vld [vmem:[#allocation11 + $0x138] sm:$0xff]  ;;  %v1232_v12 = vld [vmem:[#allocation11 + $0x1b0] sm:$0xff]  ;;  %v1231_v14 = vld [vmem:[#allocation11 + $0x1a8] sm:$0xff]  ;;  %vm3750_vm4 = vmmov 0  }
 0x1be   : > { %v1144_v33 = vsel %vm1120_vm10, %v1073_v29, %v1067_v28  ;;  %v1107_v36 = vmin.f32 %v1105_v27, %v1106_v34  ;;  %2243 = vmatpush3.msra.mxu0 %v1179_v44  ;;  %2254 = vmatpush3.msra.mxu1 %v1223_v51  ;;  %v1216_v13 = vld [vmem:[#allocation11 + $0x130] sm:$0xff]  ;;  %v1215_v15 = vld [vmem:[#allocation11 + $0x128] sm:$0xff]  ;;  %v1230_v16 = vld [vmem:[#allocation11 + $0x1a0] sm:$0xff]  ;;  %v753_v28 = vmax.f32 %v3479_v59, 1.0  ;;  %v902_v29 = vmul.f32 2.0, %v3531_v21 }
 0x1bf   : > { %v1145_v55 = vsel %vm1122_vm11, %v1079_v32, %v1144_v33  ;;  %v1102_v56 = vrot.slane %v1101_v61, 1  ;;  %2244 = vmatprep.subr.mxu0 %v1194_v46  ;;  %2255 = vmatprep.subr.mxu1 %v1238_v52  ;;  %v1214_v17 = vld [vmem:[#allocation11 + $0x120] sm:$0xff]  ;;  %v1229_v18 = vld [vmem:[#allocation11 + $0x198] sm:$0xff]  ;;  %v1228_v20 = vld [vmem:[#allocation11 + $0x190] sm:$0xff] }
 0x1c0   : > { %v1146_v38 = vsel %vm1124_vm12, %v1085_v35, %v1145_v55  ;;  %v1108_v39 = vrot.slane %v1107_v36, 1  ;;  %2245 = vmatpush3.msra.mxu0 %v1178_v48  ;;  %2256 = vmatpush3.msra.mxu1 %v1222_v53  ;;  %v1213_v19 = vld [vmem:[#allocation11 + $0x118] sm:$0xff]  ;;  %v1212_v22 = vld [vmem:[#allocation11 + $0x110] sm:$0xff]  ;;  %v1227_v23 = vld [vmem:[#allocation11 + $0x188] sm:$0xff]  ;;  %2734 = vrcp.f32 %v753_v28 }
 0x1c1   : > { %v1147_v40 = vsel %vm1126_vm13, %v1091_v54, %v1146_v38  ;;  %v1103_v57 = vmin.f32 %v1101_v61, %v1102_v56  ;;  %2284 = vmatprep.subr.mxu0 %v1413_v49  ;;  %2257 = vmatprep.subr.mxu1 %v1237_v63  ;;  %v1211_v24 = vld [vmem:[#allocation11 + $0x108] sm:$0xff]  ;;  %v1226_v25 = vld [vmem:[#allocation11 + $0x180] sm:$0xff]  ;;  %v1445_v27 = vld [vmem:[#allocation13 + $0x1f8] sm:$0xff]  ;;  %v901_v56 = vmul.f32 %v3531_v21, %v3531_v21 }
 0x1c2   : > { %v1148_v41 = vsel %vm1128_vm14, %v1097_v37, %v1147_v40  ;;  %v1109_v58 = vmin.f32 %v1107_v36, %v1108_v39  ;;  %2258 = vmatpush3.msra.mxu1 %v1221_v2  ;;  %v1210_v26 = vld [vmem:[#allocation11 + $0x100] sm:$0xff]  ;;  %v1397_v36 = vld [vmem:[#allocation13 + $0x78] sm:$0xff]  ;;  %v1412_v37 = vld [vmem:[#allocation13 + $0xf0] sm:$0xff] }
 0x1c3   : > { %v1149_v42 = vsel %vm1130_vm15, %v1103_v57, %v1148_v41  ;;  %2259 = vmatprep.subr.mxu1 %v1236_v4  ;;  %v1396_v39 = vld [vmem:[#allocation13 + $0x70] sm:$0xff]  ;;  %v1411_v40 = vld [vmem:[#allocation13 + $0xe8] sm:$0xff]  ;;  %v1394_v44 = vld [vmem:[#allocation13 + $0x60] sm:$0xff] }
 0x1c4   : > { %v3578_v43 = vsel %vm1132_vm1, %v1109_v58, %v1149_v42  ;;  %2260 = vmatpush3.msra.mxu1 %v1220_v5  ;;  %v1395_v58 = vld [vmem:[#allocation13 + $0x68] sm:$0xff]  ;;  %v1410_v42 = vld [vmem:[#allocation13 + $0xe0] sm:$0xff]  ;;  %v1409_v45 = vld [vmem:[#allocation13 + $0xd8] sm:$0xff] }
 0x1c5   : > { %2261 = vmatprep.subr.mxu1 %v1235_v6  ;;  %v1393_v47 = vld [vmem:[#allocation13 + $0x58] sm:$0xff]  ;;  %v1408_v48 = vld [vmem:[#allocation13 + $0xd0] sm:$0xff]  ;;  %v1407_v49 = vld [vmem:[#allocation13 + $0xc8] sm:$0xff] }
 0x1c6   : > { %2262 = vmatpush3.msra.mxu1 %v1219_v7  ;;  %v1392_v1 = vld [vmem:[#allocation13 + $0x50] sm:$0xff]  ;;  %v1391_v50 = vld [vmem:[#allocation13 + $0x48] sm:$0xff]  ;;  %v1406_v51 = vld [vmem:[#allocation13 + $0xc0] sm:$0xff] }
 0x1c7   : > { %2263 = vmatprep.subr.mxu1 %v1234_v8  ;;  %v1390_v52 = vld [vmem:[#allocation13 + $0x40] sm:$0xff]  ;;  %v1405_v53 = vld [vmem:[#allocation13 + $0xb8] sm:$0xff]  ;;  %v1404_v2 = vld [vmem:[#allocation13 + $0xb0] sm:$0xff] }
 0x1c8   : > { %2264 = vmatpush3.msra.mxu1 %v1218_v9  ;;  %v1389_v63 = vld [vmem:[#allocation13 + $0x38] sm:$0xff]  ;;  %v1388_v4 = vld [vmem:[#allocation13 + $0x30] sm:$0xff]  ;;  %v1403_v5 = vld [vmem:[#allocation13 + $0xa8] sm:$0xff] }
 0x1c9   : > { %2265 = vmatprep.subr.mxu1 %v1233_v10  ;;  %v1387_v6 = vld [vmem:[#allocation13 + $0x28] sm:$0xff]  ;;  %v1402_v7 = vld [vmem:[#allocation13 + $0xa0] sm:$0xff]  ;;  %v1401_v9 = vld [vmem:[#allocation13 + $0x98] sm:$0xff] }
 0x1ca   : > { %2266 = vmatpush3.msra.mxu1 %v1217_v11  ;;  %v1386_v8 = vld [vmem:[#allocation13 + $0x20] sm:$0xff]  ;;  %v1385_v10 = vld [vmem:[#allocation13 + $0x18] sm:$0xff]  ;;  %v1443_v28 = vld [vmem:[#allocation13 + $0x1e8] sm:$0xff] }
 0x1cb   : > { %2267 = vmatprep.subr.mxu1 %v1232_v12  ;;  %v1400_v12 = vld [vmem:[#allocation13 + $0x90] sm:$0xff] }
 0x1cc   : > { %2268 = vmatpush3.msra.mxu1 %v1216_v13  ;;  %v1384_v13 = vld [vmem:[#allocation13 + $0x10] sm:$0xff] }
 0x1cd   : > { %2269 = vmatprep.subr.mxu1 %v1231_v14  ;;  %v2735_v30 = vpop.eup %2734 }
 0x1ce   : > { %2270 = vmatpush3.msra.mxu1 %v1215_v15  ;;  %v1152_v15 = vsel %vm752_vm0, %v3578_v43, 0.0  ;;  %v1382_v43 = vld [vmem:[#allocation13] sm:$0xff] }
 0x1cf   : > { %2271 = vmatprep.subr.mxu1 %v1230_v16  ;;  %v1399_v16 = vld [vmem:[#allocation13 + $0x88] sm:$0xff] }
 0x1d0   : > { %2272 = vmatpush3.msra.mxu1 %v1214_v17 }
 0x1d1   : > { %2273 = vmatprep.subr.mxu1 %v1229_v18 }
 0x1d2   : > { %2274 = vmatpush3.msra.mxu1 %v1213_v19  ;;  %v1383_v19 = vld [vmem:[#allocation13 + $0x8] sm:$0xff] }
 0x1d3   : > { %2275 = vmatprep.subr.mxu1 %v1228_v20 }
 0x1d4   : > { %2276 = vmatpush3.msra.mxu1 %v1212_v22  ;;  %v3597_v22 = vadd.f32 %v1152_v15, %v3531_v21  ;;  %v1431_v15 = vld [vmem:[#allocation13 + $0x188] sm:$0xff] }
 0x1d5   : > { %2277 = vmatprep.subr.mxu1 %v1227_v23  ;;  %v1398_v23 = vld [vmem:[#allocation13 + $0x80] sm:$0xff] }
 0x1d6   : > { %2278 = vmatpush3.msra.mxu1 %v1211_v24  ;;  %v1429_v24 = vld [vmem:[#allocation13 + $0x178] sm:$0xff] }
 0x1d7   : > { %2279 = vmatprep.subr.mxu1 %v1226_v25  ;;  %v1444_v25 = vld [vmem:[#allocation13 + $0x1f0] sm:$0xff] }
 0x1d8   : > { %2280 = vmatpush3.msra.mxu1 %v1210_v26  ;;  %v1428_v26 = vld [vmem:[#allocation13 + $0x170] sm:$0xff] }
 0x1d9   : > { %2319 = vmatprep.subr.mxu1 %v1445_v27  ;;  %v1617_v27 = vld [vmem:[#allocation14 + $0xf8] sm:$0xff] }
 0x261   : > { %v824_v31 = vpop.f32.mrf.mxu0 }
 0x262   : > { %v899_v32 = vmul.f32 %v2735_v30, %v824_v31  ;;  %v903_v34 = vmul.f32 %v902_v29, %v824_v31  ;;  %v1601_v29 = vld [vmem:[#allocation14 + $0x78] sm:$0xff]  ;;  %v1442_v31 = vld [vmem:[#allocation13 + $0x1e0] sm:$0xff] }
 0x263   : > { %v895_v35 = vpop.f32.mrf.mxu1  ;;  %v2532_v61 = vpop.f32.mrf.mxu0 }
 0x264   : > { %v3583_v33 = vadd.f32 %v899_v32, %v3531_v21  ;;  %v904_v54 = vadd.f32 %v903_v34, %v895_v35  ;;  %v1427_v21 = vld [vmem:[#allocation13 + $0x168] sm:$0xff]  ;;  %v1600_v32 = vld [vmem:[#allocation14 + $0x70] sm:$0xff]  ;;  %v1426_v34 = vld [vmem:[#allocation13 + $0x160] sm:$0xff] }
 0x265   : > { %v2537_v55 = vpop.f32.mrf.mxu1  ;;  %v1615_v35 = vld [vmem:[#allocation14 + $0xe8] sm:$0xff]  ;;  %v1441_v61 = vld [vmem:[#allocation13 + $0x1d8] sm:$0xff] }
 0x266   : > { %v905_v38 = vmul.f32 %v2735_v30, %v904_v54  ;;  %1307 = vmatmul.mubr.f32.vlgmr.msra.gmra.mxu0 %v3583_v33  ;;  %v907_v41 = vmul.f32 %v3583_v33, %v3583_v33  ;;  %v1616_v30 = vld [vmem:[#allocation14 + $0xf0] sm:$0xff]  ;;  %v1599_v54 = vld [vmem:[#allocation14 + $0x68] sm:$0xff]  ;;  %v1614_v55 = vld [vmem:[#allocation14 + $0xe0] sm:$0xff] }
 0x267   : > { %2285 = vmatpush3.msra.mxu0 %v1397_v36  ;;  %1510 = vmatprep.mubr.f32.mxu0 %v3568_v3  ;;  %v1425_v36 = vld [vmem:[#allocation13 + $0x158] sm:$0xff] }
 0x268   : > { %v906_v57 = vadd.f32 %v905_v38, %v901_v56  ;;  %2286 = vmatprep.subr.mxu0 %v1412_v37  ;;  %v1440_v37 = vld [vmem:[#allocation13 + $0x1d0] sm:$0xff]  ;;  %v1598_v56 = vld [vmem:[#allocation14 + $0x60] sm:$0xff] }
 0x269   : > { %2287 = vmatpush3.msra.mxu0 %v1396_v39  ;;  %v1424_v38 = vld [vmem:[#allocation13 + $0x150] sm:$0xff]  ;;  %v1613_v39 = vld [vmem:[#allocation14 + $0xd8] sm:$0xff] }
 0x26a   : > { %v908_v60 = vsub.f32 %v906_v57, %v907_v41  ;;  %2288 = vmatprep.subr.mxu0 %v1411_v40  ;;  %v1439_v40 = vld [vmem:[#allocation13 + $0x1c8] sm:$0xff]  ;;  %v1612_v41 = vld [vmem:[#allocation14 + $0xd0] sm:$0xff] }
 0x26b   : > { %2289 = vmatpush3.msra.mxu0 %v1395_v58  ;;  %v1423_v57 = vld [vmem:[#allocation13 + $0x148] sm:$0xff]  ;;  %v1438_v58 = vld [vmem:[#allocation13 + $0x1c0] sm:$0xff] }
 0x26c   : > { %v909_v46 = vmax.f32 %v908_v60, 0.0  ;;  %2290 = vmatprep.subr.mxu0 %v1410_v42  ;;  %v1596_v42 = vld [vmem:[#allocation14 + $0x50] sm:$0xff]  ;;  %v1422_v60 = vld [vmem:[#allocation13 + $0x140] sm:$0xff] }
 0x26d   : > { %2291 = vmatpush3.msra.mxu0 %v1394_v44  ;;  %v1611_v44 = vld [vmem:[#allocation14 + $0xc8] sm:$0xff] }
 0x26e   : > { %v910_v62 = vadd.f32 1e-05, %v909_v46  ;;  %2292 = vmatprep.subr.mxu0 %v1409_v45  ;;  %v1437_v45 = vld [vmem:[#allocation13 + $0x1b8] sm:$0xff]  ;;  %v1595_v46 = vld [vmem:[#allocation14 + $0x48] sm:$0xff] }
 0x26f   : > { %2293 = vmatpush3.msra.mxu0 %v1393_v47  ;;  %v1421_v47 = vld [vmem:[#allocation13 + $0x138] sm:$0xff] }
 0x270   : > { %2294 = vmatprep.subr.mxu0 %v1408_v48  ;;  %2736 = vrsqrt.f32 %v910_v62  ;;  %vm913_vm2 = vcmp.eq.f32.partialorder %v910_v62, inf  ;;  %v916_v17 = vand.u32 2147483648, %v910_v62  ;;  %vm915_vm3 = vcmp.eq.f32.partialorder %v910_v62, 0.0  ;;  %v1610_v48 = vld [vmem:[#allocation14 + $0xc0] sm:$0xff] }
 0x271   : > { %2295 = vmatpush3.msra.mxu0 %v1392_v1  ;;  %v1594_v1 = vld [vmem:[#allocation14 + $0x40] sm:$0xff] }
 0x272   : > { %2296 = vmatprep.subr.mxu0 %v1407_v49  ;;  %v1420_v49 = vld [vmem:[#allocation13 + $0x130] sm:$0xff] }
 0x273   : > { %2297 = vmatpush3.msra.mxu0 %v1391_v50  ;;  %v1609_v50 = vld [vmem:[#allocation14 + $0xb8] sm:$0xff] }
 0x274   : > { %2298 = vmatprep.subr.mxu0 %v1406_v51  ;;  %v1435_v51 = vld [vmem:[#allocation13 + $0x1a8] sm:$0xff] }
 0x275   : > { %2299 = vmatpush3.msra.mxu0 %v1390_v52  ;;  %v1593_v52 = vld [vmem:[#allocation14 + $0x38] sm:$0xff] }
 0x276   : > { %2300 = vmatprep.subr.mxu0 %v1405_v53  ;;  %v1419_v53 = vld [vmem:[#allocation13 + $0x128] sm:$0xff] }
 0x277   : > { %2301 = vmatpush3.msra.mxu0 %v1389_v63  ;;  %v1608_v63 = vld [vmem:[#allocation14 + $0xb0] sm:$0xff] }
 0x278   : > { %2302 = vmatprep.subr.mxu0 %v1404_v2  ;;  %v1434_v2 = vld [vmem:[#allocation13 + $0x1a0] sm:$0xff] }
 0x279   : > { %2303 = vmatpush3.msra.mxu0 %v1388_v4  ;;  %v1592_v4 = vld [vmem:[#allocation14 + $0x30] sm:$0xff] }
 0x27a   : > { %2304 = vmatprep.subr.mxu0 %v1403_v5  ;;  %v1418_v5 = vld [vmem:[#allocation13 + $0x120] sm:$0xff] }
 0x27b   : > { %2305 = vmatpush3.msra.mxu0 %v1387_v6  ;;  %v1607_v6 = vld [vmem:[#allocation14 + $0xa8] sm:$0xff] }
 0x27c   : > { %2306 = vmatprep.subr.mxu0 %v1402_v7  ;;  %v1433_v7 = vld [vmem:[#allocation13 + $0x198] sm:$0xff] }
 0x27d   : > { %v2737_v11 = vpop.eup %2736  ;;  %2307 = vmatpush3.msra.mxu0 %v1386_v8  ;;  %v1591_v8 = vld [vmem:[#allocation14 + $0x28] sm:$0xff] }
 0x27e   : > { %2308 = vmatprep.subr.mxu0 %v1401_v9  ;;  %v912_v14 = vmul.f32 %v2737_v11, %v910_v62  ;;  %v1417_v9 = vld [vmem:[#allocation13 + $0x118] sm:$0xff]  ;;  %v1432_v11 = vld [vmem:[#allocation13 + $0x190] sm:$0xff] }
 0x27f   : > { %2309 = vmatpush3.msra.mxu0 %v1385_v10  ;;  %v1606_v10 = vld [vmem:[#allocation14 + $0xa0] sm:$0xff] }
 0x280   : > { %2310 = vmatprep.subr.mxu0 %v1400_v12  ;;  %v914_v18 = vsel %vm913_vm2, %v910_v62, %v912_v14  ;;  %v1436_v62 = vld [vmem:[#allocation13 + $0x1b0] sm:$0xff]  ;;  %v1590_v12 = vld [vmem:[#allocation14 + $0x20] sm:$0xff]  ;;  %v1605_v14 = vld [vmem:[#allocation14 + $0x98] sm:$0xff] }
 0x281   : > { %2311 = vmatpush3.msra.mxu0 %v1384_v13  ;;  %v3594_v20 = vsel %vm915_vm3, %v916_v17, %v914_v18  ;;  %v1416_v13 = vld [vmem:[#allocation13 + $0x110] sm:$0xff]  ;;  %v1415_v17 = vld [vmem:[#allocation13 + $0x108] sm:$0xff] }
 0x282   : > { %2312 = vmatprep.subr.mxu0 %v1399_v16  ;;  %1376 = vmatprep.mubr.f32.mxu1 %v3594_v20  ;;  %v1589_v16 = vld [vmem:[#allocation14 + $0x18] sm:$0xff]  ;;  %v1604_v18 = vld [vmem:[#allocation14 + $0x90] sm:$0xff] }
 0x283   : > { %2313 = vmatpush3.msra.mxu0 %v1383_v19  ;;  %1377 = vmatmul.mubr.f32.vlgmr.msra.gmra.mxu1 %v3597_v22  ;;  %v1430_v19 = vld [vmem:[#allocation13 + $0x180] sm:$0xff] }
 0x284   : > { %2314 = vmatprep.subr.mxu0 %v1398_v23  ;;  %2320 = vmatpush3.msra.mxu1 %v1429_v24  ;;  %v1588_v23 = vld [vmem:[#allocation14 + $0x10] sm:$0xff]  ;;  %v1414_v24 = vld [vmem:[#allocation13 + $0x100] sm:$0xff] }
 0x285   : > { %2315 = vmatpush3.msra.mxu0 %v1382_v43  ;;  %2321 = vmatprep.subr.mxu1 %v1444_v25  ;;  %v1603_v43 = vld [vmem:[#allocation14 + $0x88] sm:$0xff] }
 0x286   : > { %1580 = vmatprep.mubr.f32.mxu1 %v3594_v20  ;;  %1511 = vmatmul.mubr.f32.vlgmr.msra.gmra.mxu0 %v3583_v33  ;;  %v1587_v25 = vld [vmem:[#allocation14 + $0x8] sm:$0xff] }
 0x287   : > { %2322 = vmatpush3.msra.mxu1 %v1428_v26  ;;  %2354 = vmatprep.subr.mxu0 %v1617_v27  ;;  %v1649_v26 = vld [vmem:[#allocation14 + $0x1f8] sm:$0xff]  ;;  %v1602_v27 = vld [vmem:[#allocation14 + $0x80] sm:$0xff] }
 0x288   : > { %2323 = vmatprep.subr.mxu1 %v1443_v28  ;;  %2355 = vmatpush3.msra.mxu0 %v1601_v29  ;;  %v1633_v28 = vld [vmem:[#allocation14 + $0x178] sm:$0xff]  ;;  %v1586_v29 = vld [vmem:[#allocation14] sm:$0xff] }
 0x289   : > { %1714 = vmatprep.mubr.f32.mxu0 %v3568_v3  ;;  %2324 = vmatpush3.msra.mxu1 %v1427_v21  ;;  %v1597_v3 = vld [vmem:[#allocation14 + $0x58] sm:$0xff]  ;;  %v1648_v21 = vld [vmem:[#allocation14 + $0x1f0] sm:$0xff] }
 0x28a   : > { %2356 = vmatprep.subr.mxu0 %v1616_v30  ;;  %2325 = vmatprep.subr.mxu1 %v1442_v31  ;;  %v1632_v30 = vld [vmem:[#allocation14 + $0x170] sm:$0xff]  ;;  %v1647_v31 = vld [vmem:[#allocation14 + $0x1e8] sm:$0xff] }
 0x28b   : > { %2357 = vmatpush3.msra.mxu0 %v1600_v32  ;;  %2326 = vmatpush3.msra.mxu1 %v1426_v34  ;;  %v1177_v32 = vld [vmem:[#allocation10 + $0x78] sm:$0xff]  ;;  %v1631_v34 = vld [vmem:[#allocation14 + $0x168] sm:$0xff] }
 0x28c   : > { %2358 = vmatprep.subr.mxu0 %v1615_v35  ;;  %2327 = vmatprep.subr.mxu1 %v1441_v61  ;;  %v1646_v35 = vld [vmem:[#allocation14 + $0x1e0] sm:$0xff]  ;;  %v1176_v61 = vld [vmem:[#allocation10 + $0x70] sm:$0xff] }
 0x28d   : > { %2359 = vmatpush3.msra.mxu0 %v1599_v54  ;;  %2328 = vmatpush3.msra.mxu1 %v1425_v36  ;;  %v1630_v54 = vld [vmem:[#allocation14 + $0x160] sm:$0xff]  ;;  %v1645_v36 = vld [vmem:[#allocation14 + $0x1d8] sm:$0xff] }
 0x28e   : > { %2360 = vmatprep.subr.mxu0 %v1614_v55  ;;  %2329 = vmatprep.subr.mxu1 %v1440_v37  ;;  %v1629_v55 = vld [vmem:[#allocation14 + $0x158] sm:$0xff]  ;;  %v1174_v37 = vld [vmem:[#allocation10 + $0x60] sm:$0xff] }
 0x28f   : > { %2361 = vmatpush3.msra.mxu0 %v1598_v56  ;;  %2330 = vmatpush3.msra.mxu1 %v1424_v38  ;;  %v1628_v56 = vld [vmem:[#allocation14 + $0x150] sm:$0xff]  ;;  %v1643_v38 = vld [vmem:[#allocation14 + $0x1c8] sm:$0xff] }
 0x290   : > { %2362 = vmatprep.subr.mxu0 %v1613_v39  ;;  %2331 = vmatprep.subr.mxu1 %v1439_v40  ;;  %v1173_v39 = vld [vmem:[#allocation10 + $0x58] sm:$0xff]  ;;  %v1627_v40 = vld [vmem:[#allocation14 + $0x148] sm:$0xff] }
 0x291   : > { %2363 = vmatpush3.msra.mxu0 %v1597_v3  ;;  %2332 = vmatpush3.msra.mxu1 %v1423_v57  ;;  %v1642_v3 = vld [vmem:[#allocation14 + $0x1c0] sm:$0xff]  ;;  %v1172_v57 = vld [vmem:[#allocation10 + $0x50] sm:$0xff] }
 0x292   : > { %2364 = vmatprep.subr.mxu0 %v1612_v41  ;;  %2333 = vmatprep.subr.mxu1 %v1438_v58  ;;  %v1626_v41 = vld [vmem:[#allocation14 + $0x140] sm:$0xff]  ;;  %v1641_v58 = vld [vmem:[#allocation14 + $0x1b8] sm:$0xff] }
 0x293   : > { %2365 = vmatpush3.msra.mxu0 %v1596_v42  ;;  %2334 = vmatpush3.msra.mxu1 %v1422_v60  ;;  %v1171_v42 = vld [vmem:[#allocation10 + $0x48] sm:$0xff]  ;;  %v1625_v60 = vld [vmem:[#allocation14 + $0x138] sm:$0xff] }
 0x294   : > { %2366 = vmatprep.subr.mxu0 %v1611_v44  ;;  %2335 = vmatprep.subr.mxu1 %v1437_v45  ;;  %v1640_v44 = vld [vmem:[#allocation14 + $0x1b0] sm:$0xff]  ;;  %v1170_v45 = vld [vmem:[#allocation10 + $0x40] sm:$0xff] }
 0x295   : > { %2367 = vmatpush3.msra.mxu0 %v1595_v46  ;;  %2336 = vmatpush3.msra.mxu1 %v1421_v47  ;;  %v1624_v46 = vld [vmem:[#allocation14 + $0x130] sm:$0xff]  ;;  %v1639_v47 = vld [vmem:[#allocation14 + $0x1a8] sm:$0xff] }
 0x296   : > { %2368 = vmatprep.subr.mxu0 %v1610_v48  ;;  %2337 = vmatprep.subr.mxu1 %v1436_v62  ;;  %v1169_v48 = vld [vmem:[#allocation10 + $0x38] sm:$0xff]  ;;  %v1623_v62 = vld [vmem:[#allocation14 + $0x128] sm:$0xff] }
 0x297   : > { %2369 = vmatpush3.msra.mxu0 %v1594_v1  ;;  %2338 = vmatpush3.msra.mxu1 %v1420_v49  ;;  %v1638_v1 = vld [vmem:[#allocation14 + $0x1a0] sm:$0xff]  ;;  %v1168_v49 = vld [vmem:[#allocation10 + $0x30] sm:$0xff] }
 0x298   : > { %2370 = vmatprep.subr.mxu0 %v1609_v50  ;;  %2339 = vmatprep.subr.mxu1 %v1435_v51  ;;  %v1622_v50 = vld [vmem:[#allocation14 + $0x120] sm:$0xff]  ;;  %v1637_v51 = vld [vmem:[#allocation14 + $0x198] sm:$0xff] }
 0x299   : > { %2371 = vmatpush3.msra.mxu0 %v1593_v52  ;;  %2340 = vmatpush3.msra.mxu1 %v1419_v53  ;;  %v1167_v52 = vld [vmem:[#allocation10 + $0x28] sm:$0xff]  ;;  %v1621_v53 = vld [vmem:[#allocation14 + $0x118] sm:$0xff] }
 0x29a   : > { %2372 = vmatprep.subr.mxu0 %v1608_v63  ;;  %2341 = vmatprep.subr.mxu1 %v1434_v2  ;;  %v1636_v63 = vld [vmem:[#allocation14 + $0x190] sm:$0xff]  ;;  %v1166_v2 = vld [vmem:[#allocation10 + $0x20] sm:$0xff] }
 0x29b   : > { %2373 = vmatpush3.msra.mxu0 %v1592_v4  ;;  %2342 = vmatpush3.msra.mxu1 %v1418_v5  ;;  %v1620_v4 = vld [vmem:[#allocation14 + $0x110] sm:$0xff]  ;;  %v1635_v5 = vld [vmem:[#allocation14 + $0x188] sm:$0xff] }
 0x29c   : > { %2374 = vmatprep.subr.mxu0 %v1607_v6  ;;  %2343 = vmatprep.subr.mxu1 %v1433_v7  ;;  %v1165_v6 = vld [vmem:[#allocation10 + $0x18] sm:$0xff]  ;;  %v1619_v7 = vld [vmem:[#allocation14 + $0x108] sm:$0xff] }
 0x29d   : > { %2375 = vmatpush3.msra.mxu0 %v1591_v8  ;;  %2344 = vmatpush3.msra.mxu1 %v1417_v9  ;;  %v1634_v8 = vld [vmem:[#allocation14 + $0x180] sm:$0xff]  ;;  %v1164_v9 = vld [vmem:[#allocation10 + $0x10] sm:$0xff] }
 0x29e   : > { %2376 = vmatprep.subr.mxu0 %v1606_v10  ;;  %2345 = vmatprep.subr.mxu1 %v1432_v11  ;;  %v1618_v10 = vld [vmem:[#allocation14 + $0x100] sm:$0xff]  ;;  %v1163_v11 = vld [vmem:[#allocation10 + $0x8] sm:$0xff] }
 0x29f   : > { %2377 = vmatpush3.msra.mxu0 %v1590_v12  ;;  %2346 = vmatpush3.msra.mxu1 %v1416_v13  ;;  %v1162_v12 = vld [vmem:[#allocation10] sm:$0xff] }
 0x2a0   : > { %2378 = vmatprep.subr.mxu0 %v1605_v14  ;;  %2347 = vmatprep.subr.mxu1 %v1431_v15  ;;  %v2742_v13 = vld [vmem:[%s484_s26] sm:$0xff]  ;;  %v1887_v14 = vld [vmem:[#allocation16 + $0x78] sm:$0xff]  ;;  %v1886_v15 = vld [vmem:[#allocation16 + $0x70] sm:$0xff]  ;;  %s1970_s26 = scalar_lea.sflag [#allocation4], %s3368_s10 }
 0x2a1   : > { %2379 = vmatpush3.msra.mxu0 %v1589_v16  ;;  %2348 = vmatpush3.msra.mxu1 %v1415_v17  ;;  %v1884_v16 = vld [vmem:[#allocation16 + $0x60] sm:$0xff]  ;;  %v1883_v17 = vld [vmem:[#allocation16 + $0x58] sm:$0xff] }
 0x2a2   : > { %2380 = vmatprep.subr.mxu0 %v1604_v18  ;;  %2349 = vmatprep.subr.mxu1 %v1430_v19  ;;  %v1882_v18 = vld [vmem:[#allocation16 + $0x50] sm:$0xff]  ;;  %v1881_v19 = vld [vmem:[#allocation16 + $0x48] sm:$0xff] }
 0x2a3   : > { %2381 = vmatpush3.msra.mxu0 %v1588_v23  ;;  %2350 = vmatpush3.msra.mxu1 %v1414_v24  ;;  %v1880_v23 = vld [vmem:[#allocation16 + $0x40] sm:$0xff]  ;;  %v1879_v24 = vld [vmem:[#allocation16 + $0x38] sm:$0xff] }
 0x2a4   : > { %2382 = vmatprep.subr.mxu0 %v1603_v43  ;;  %1581 = vmatmul.mubr.f32.vlgmr.msra.gmra.mxu1 %v3597_v22  ;;  %v1878_v43 = vld [vmem:[#allocation16 + $0x30] sm:$0xff] }
 0x2a5   : > { %2383 = vmatpush3.msra.mxu0 %v1587_v25  ;;  %2389 = vmatprep.subr.mxu1 %v1649_v26  ;;  %v1877_v25 = vld [vmem:[#allocation16 + $0x28] sm:$0xff]  ;;  %v1876_v26 = vld [vmem:[#allocation16 + $0x20] sm:$0xff] }
 0x2a6   : > { %2384 = vmatprep.subr.mxu0 %v1602_v27  ;;  %2390 = vmatpush3.msra.mxu1 %v1633_v28  ;;  %v1875_v27 = vld [vmem:[#allocation16 + $0x18] sm:$0xff]  ;;  %v1874_v28 = vld [vmem:[#allocation16 + $0x10] sm:$0xff] }
 0x2a7   : > { %1784 = vmatprep.mubr.f32.mxu1 %v3594_v20  ;;  %2385 = vmatpush3.msra.mxu0 %v1586_v29  ;;  %v1175_v20 = vld [vmem:[#allocation10 + $0x68] sm:$0xff] }
 0x2a8   : > { %2391 = vmatprep.subr.mxu1 %v1648_v21  ;;  %1715 = vmatmul.mubr.f32.vlgmr.msra.gmra.mxu0 %v3583_v33  ;;  %v1644_v33 = vld [vmem:[#allocation14 + $0x1d0] sm:$0xff]  ;;  %v1873_v29 = vld [vmem:[#allocation16 + $0x8] sm:$0xff]  ;;  %v1872_v21 = vld [vmem:[#allocation16] sm:$0xff] }
 0x2a9   : > { %2392 = vmatpush3.msra.mxu1 %v1632_v30  ;;  %2538 = vmatprep.subr.mxu0 %v3078_v0  ;;  %v1155_v30 = vadd.f32 1.0, %v3479_v59 }
 0x2aa   : > { %2393 = vmatprep.subr.mxu1 %v1647_v31  ;;  %2539 = vmatpush3.msra.mxu0 %v1177_v32 }
 0x2ab   : > { %2394 = vmatpush3.msra.mxu1 %v1631_v34  ;;  %2540 = vmatprep.subr.mxu0 %v3078_v0  ;;  %2738 = vlog2.f32 %v1155_v30 }
 0x2ac   : > { %2395 = vmatprep.subr.mxu1 %v1646_v35  ;;  %2541 = vmatpush3.msra.mxu0 %v1176_v61 }
 0x2ad   : > { %2396 = vmatpush3.msra.mxu1 %v1630_v54  ;;  %2542 = vmatprep.subr.mxu0 %v3078_v0 }
 0x2ae   : > { %2397 = vmatprep.subr.mxu1 %v1645_v36  ;;  %2543 = vmatpush3.msra.mxu0 %v1175_v20 }
 0x2af   : > { %2398 = vmatpush3.msra.mxu1 %v1629_v55  ;;  %2544 = vmatprep.subr.mxu0 %v3078_v0 }
 0x2b0   : > { %2399 = vmatprep.subr.mxu1 %v1644_v33  ;;  %2545 = vmatpush3.msra.mxu0 %v1174_v37 }
 0x2b1   : > { %2400 = vmatpush3.msra.mxu1 %v1628_v56  ;;  %2546 = vmatprep.subr.mxu0 %v3078_v0 }
 0x2b2   : > { %2401 = vmatprep.subr.mxu1 %v1643_v38  ;;  %2547 = vmatpush3.msra.mxu0 %v1173_v39 }
 0x2b3   : > { %2402 = vmatpush3.msra.mxu1 %v1627_v40  ;;  %2548 = vmatprep.subr.mxu0 %v3078_v0 }
 0x2b4   : > { %2403 = vmatprep.subr.mxu1 %v1642_v3  ;;  %2549 = vmatpush3.msra.mxu0 %v1172_v57 }
 0x2b5   : > { %2404 = vmatpush3.msra.mxu1 %v1626_v41  ;;  %2550 = vmatprep.subr.mxu0 %v3078_v0 }
 0x2b6   : > { %2405 = vmatprep.subr.mxu1 %v1641_v58  ;;  %2551 = vmatpush3.msra.mxu0 %v1171_v42 }
 0x2b7   : > { %2406 = vmatpush3.msra.mxu1 %v1625_v60  ;;  %2552 = vmatprep.subr.mxu0 %v3078_v0 }
 0x2b8   : > { %2407 = vmatprep.subr.mxu1 %v1640_v44  ;;  %2553 = vmatpush3.msra.mxu0 %v1170_v45  ;;  %v2739_v31 = vpop.eup %2738 }
 0x2b9   : > { %2408 = vmatpush3.msra.mxu1 %v1624_v46  ;;  %2554 = vmatprep.subr.mxu0 %v3078_v0  ;;  %v1157_v32 = vmul.f32 0.6931472, %v2739_v31 }
 0x2ba   : > { %2409 = vmatprep.subr.mxu1 %v1639_v47  ;;  %2555 = vmatpush3.msra.mxu0 %v1169_v48 }
 0x2bb   : > { %2410 = vmatpush3.msra.mxu1 %v1623_v62  ;;  %2556 = vmatprep.subr.mxu0 %v3078_v0  ;;  %v1159_v61 = vsel %vm752_vm0, %v1157_v32, 1.0  ;;  %v1158_v60 = vmul.f32 0.5759351, %v1157_v32 }
 0x2bc   : > { %2411 = vmatprep.subr.mxu1 %v1638_v1  ;;  %2557 = vmatpush3.msra.mxu0 %v1168_v49  ;;  %2740 = vrcp.f32 %v1159_v61 }
 0x2bd   : > { %2412 = vmatpush3.msra.mxu1 %v1622_v50  ;;  %2558 = vmatprep.subr.mxu0 %v3078_v0 }
 0x2be   : > { %2413 = vmatprep.subr.mxu1 %v1637_v51  ;;  %2559 = vmatpush3.msra.mxu0 %v1167_v52  ;;  %v2170_v52 = vld [vmem:[%s3706_s9] ss:$0 sm:$0xff] }
 0x2bf   : > { %2414 = vmatpush3.msra.mxu1 %v1621_v53  ;;  %2560 = vmatprep.subr.mxu0 %v3078_v0 }
 0x2c0   : > { %2415 = vmatprep.subr.mxu1 %v1636_v63  ;;  %2561 = vmatpush3.msra.mxu0 %v1166_v2  ;;  %v2171_v2 = vld [vmem:[%s3708_s11] ss:$0 sm:$0xff] }
 0x2c1   : > { %2416 = vmatpush3.msra.mxu1 %v1620_v4  ;;  %2562 = vmatprep.subr.mxu0 %v3078_v0 }
 0x2c2   : > { %2417 = vmatprep.subr.mxu1 %v1635_v5  ;;  %2563 = vmatpush3.msra.mxu0 %v1165_v6 }
 0x2c3   : > { %2418 = vmatpush3.msra.mxu1 %v1619_v7  ;;  %2564 = vmatprep.subr.mxu0 %v3078_v0 }
 0x2c4   : > { %2419 = vmatprep.subr.mxu1 %v1634_v8  ;;  %2565 = vmatpush3.msra.mxu0 %v1164_v9 }
 0x2c5   : > { %2420 = vmatpush3.msra.mxu1 %v1618_v10  ;;  %2566 = vmatprep.subr.mxu0 %v3078_v0 }
 0x2c6   : > { %1785 = vmatmul.mubr.f32.vlgmr.msra.gmra.mxu1 %v3597_v22  ;;  %2567 = vmatpush3.msra.mxu0 %v1163_v11  ;;  %v1885_v22 = vld [vmem:[#allocation16 + $0x68] sm:$0xff] }
 0x2c7   : > { %2568 = vmatprep.subr.mxu0 %v3078_v0  ;;  %2570 = vmatprep.mubr.msk.f32.mxu0 %vm3750_vm4, %v3078_v0 }
 0x2c8   : > { %2569 = vmatpush3.msra.mxu0 %v1162_v12  ;;  %2573 = vmatprep.subr.mxu1 %v3078_v0 }
 0x2c9   : > { %2571 = vmatmul.mubr.f32.vlgmr.msra.gmra.mxu0 %v2742_v13  ;;  %2605 = vmatprep.mubr.msk.f32.mxu1 %vm3750_vm4, %v3078_v0  ;;  %v2741_v58 = vpop.eup %2740 }
 0x2ca   : > { %2574 = vmatpush3.msra.mxu1 %v1887_v14  ;;  %v1161_v62 = vmul.f32 1.7363067, %v2741_v58 }
 0x2cb   : > { %2575 = vmatprep.subr.mxu1 %v3078_v0 }
 0x2cc   : > { %2576 = vmatpush3.msra.mxu1 %v1886_v15 }
 0x2cd   : > { %2577 = vmatprep.subr.mxu1 %v3078_v0 }
 0x2ce   : > { %2578 = vmatpush3.msra.mxu1 %v1885_v22 }
 0x2cf   : > { %2579 = vmatprep.subr.mxu1 %v3078_v0 }
 0x2d0   : > { %2580 = vmatpush3.msra.mxu1 %v1884_v16 }
 0x2d1   : > { %2581 = vmatprep.subr.mxu1 %v3078_v0 }
 0x2d2   : > { %2582 = vmatpush3.msra.mxu1 %v1883_v17 }
 0x2d3   : > { %2583 = vmatprep.subr.mxu1 %v3078_v0 }
 0x2d4   : > { %2584 = vmatpush3.msra.mxu1 %v1882_v18 }
 0x2d5   : > { %2585 = vmatprep.subr.mxu1 %v3078_v0 }
 0x2d6   : > { %2586 = vmatpush3.msra.mxu1 %v1881_v19 }
 0x2d7   : > { %2587 = vmatprep.subr.mxu1 %v3078_v0 }
 0x2d8   : > { %2588 = vmatpush3.msra.mxu1 %v1880_v23 }
 0x2d9   : > { %2589 = vmatprep.subr.mxu1 %v3078_v0 }
 0x2da   : > { %2590 = vmatpush3.msra.mxu1 %v1879_v24 }
 0x2db   : > { %2591 = vmatprep.subr.mxu1 %v3078_v0 }
 0x2dc   : > { %2592 = vmatpush3.msra.mxu1 %v1878_v43 }
 0x2dd   : > { %2593 = vmatprep.subr.mxu1 %v3078_v0 }
 0x2de   : > { %2594 = vmatpush3.msra.mxu1 %v1877_v25 }
 0x2df   : > { %2595 = vmatprep.subr.mxu1 %v3078_v0 }
 0x2e0   : > { %2596 = vmatpush3.msra.mxu1 %v1876_v26 }
 0x2e1   : > { %2597 = vmatprep.subr.mxu1 %v3078_v0 }
 0x2e2   : > { %2598 = vmatpush3.msra.mxu1 %v1875_v27 }
 0x2e3   : > { %2599 = vmatprep.subr.mxu1 %v3078_v0 }
 0x2e4   : > { %2600 = vmatpush3.msra.mxu1 %v1874_v28 }
 0x2e5   : > { %2601 = vmatprep.subr.mxu1 %v3078_v0 }
 0x2e6   : > { %2602 = vmatpush3.msra.mxu1 %v1873_v29 }
 0x2e7   : > { %2603 = vmatprep.subr.mxu1 %v3078_v0 }
 0x2e8   : > { %2604 = vmatpush3.msra.mxu1 %v1872_v21 }
 0x326   : > { %v2246_v35 = vpop.f32.mrf.mxu0 }
 0x328   : > { %v2247_v36 = vpop.f32.mrf.mxu0 }
 0x329   : > { %v2248_v40 = vadd.f32 %v2247_v36, %v2246_v35 }
 0x343   : > { %v2281_v34 = vpop.f32.mrf.mxu1 }
 0x345   : > { %v2282_v54 = vpop.f32.mrf.mxu1 }
 0x346   : > { %v2316_v55 = vpop.f32.mrf.mxu0  ;;  %v2283_v38 = vadd.f32 %v2282_v54, %v2281_v34 }
 0x348   : > { %v2317_v37 = vpop.f32.mrf.mxu0  ;;  %v1379_v59 = vadd.f32 %v2283_v38, %v2248_v40 }
 0x349   : > { %v2318_v39 = vadd.f32 %v2317_v37, %v2316_v55 }
 0x364   : > { %v2351_v20 = vpop.f32.mrf.mxu1 }
 0x366   : > { %v2352_v33 = vpop.f32.mrf.mxu1 }
 0x367   : > { %v2353_v56 = vadd.f32 %v2352_v33, %v2351_v20 }
 0x368   : > { %v2386_v0 = vpop.f32.mrf.mxu0 }
 0x369   : > { %v1583_v3 = vadd.f32 %v2353_v56, %v2318_v39 }
 0x36a   : > { %v2387_v57 = vpop.f32.mrf.mxu0 }
 0x36b   : > { %v2388_v44 = vadd.f32 %v2387_v57, %v2386_v0  ;;  %v1860_v48 = vmul.f32 %v1583_v3, %v1158_v60 }
 0x386   : > { %v2421_v41 = vpop.f32.mrf.mxu1 }
 0x388   : > { %v2422_v42 = vpop.f32.mrf.mxu1 }
 0x389   : > { %v2423_v45 = vadd.f32 %v2422_v42, %v2421_v41  ;;  %v1856_v46 = vpop.f32.mrf.mxu0 }
 0x38a   : > { %v1857_v47 = vadd.f32 %v1856_v46, %v1379_v59 }
 0x38b   : > { %v1787_v1 = vadd.f32 %v2423_v45, %v2388_v44  ;;  %v2572_v49 = vpop.f32.mrf.mxu0 }
 0x38c   : > { %v1861_v50 = vadd.f32 %v1860_v48, %v1857_v47 }
 0x38d   : > { %v1862_v51 = vmul.f32 %v1787_v1, %v1161_v62 }
 0x38f   : > { %v1863_v53 = vadd.f32 %v1862_v51, %v1861_v50 }
 0x391   : > { %v1871_v63 = vadd.f32 %v2170_v52, %v1863_v53 }
 0x393   : > { %2606 = vmatmul.mubr.f32.vlgmr.msra.gmra.mxu1 %v1871_v63 }
 0x453   : > { %v1961_v4 = vpop.f32.mrf.mxu1 }
 0x454   : > { %v1962_v5 = vadd.f32 %v2171_v2, %v1961_v4 }
 0x455   : > { %v2607_v6 = vpop.f32.mrf.mxu1 }
 0x456   : > { %vm1965_vm0 = vcmp.gt.f32.partialorder %v1962_v5, 0.0  ;;  %v1966_v7 = vmul.f32 0.01, %v1962_v5 }
 0x458   : > { %v1967_v8 = vsel %vm1965_vm0, %v1962_v5, %v1966_v7 }
 0x459   : > { %1968 = vst [vmem:[%s566_s25] sm:$0xff] %v1967_v8 }
 0x45a   : > { %2994 = shalt.err (!%p2991_p8)
}
 0x45b   : > { %s2995_s28 = scalar_lea.hbm %s3660_s14, 128  ;;  %s2999_s15 = scalar_lea.hbm %s3709_s12, 256 }
 0x45c   : > { %p2996_p6 = scmp.ne.s32.totalorder %s3660_s14, %s2995_s28  ;;  %p3000_p5 = scmp.lt.s32.totalorder %s3660_s14, %s3709_s12 }
 0x45d   : > { %p3001_p10 = scmp.lt.s32.totalorder %s2999_s15, %s2995_s28 }
 0x45e   : > { %p2997_p11 = pnand %p2996_p6, %p3751_p13 }
 0x45f   : > { %p3002_p9 = por %p3001_p10, %p3000_p5 }
 0x460   : > { %p2998_p2 = pneg %p2997_p11 }
 0x462   : > { %p3003_p12 = pnand %p3002_p9, %p2998_p2 }
 0x464   : > { %3006 = shalt.err (!%p3003_p12)
}
 0x465   : > { %2640 = dma.vmem_to_hbm [thread:$0]  (%p3751_p13), %s1984_s29, 128, %s3660_s14, %s1970_s26  }
 0x466 PF: > { %s1995_s6 = sand.u32 1, %s3053_s21   ;;  %p3752_p1 = scmp.ne.s32.totalorder %s3738_s20, 0 }
 0x467   : > { %p3753_p3 = scmp.ge.s32.totalorder %s3065_s24, 2  ;;  %s1996_s19 = scalar_lea.sflag [#allocation4], %s1995_s6 }
 0x469   : > { %p2672_p4 = pnand %p3753_p3, %p3752_p1 }
 0x46b   : > { %p2673_p0 = pneg %p2672_p4 }
 0x46d   : > { %3048 = dma.done.wait (%p2673_p0), %s1996_s19, 128  }
 0x46e   : > { %3050 = vsyncadd (%p2673_p0), %s1996_s19, 4294967168  ;;  %s3754_s8 = sld [smem:[#allocation25_spill]]  ;;  %p31_p7 = scmp.ge.s32.totalorder %s3277_s16, 4  }
 0x46f   : > { %s3755_s23 = sld [smem:[#allocation26_spill]]  ;;  %s3756_s21 = smov %s3057_s22 }
 0x470   : > { %s3758_s24 = smov %s3277_s16  ;;  %33 = sbr.rel (!%p31_p7) target bundleno = 18 (0x12), region = 154 }
 0x474   : > { %s3757_s22 = smov %s3754_s8 }
 0x475   :  { %2001 = vsyncpa [#allocation3], 1 }
 0x476   :  { %2003 = vsyncpa [#allocation3 + $0x1], 1 }
 0x477   :  { %2004 = vsyncpa [#allocation6], 1 }
 0x478   :  { %2006 = vsyncpa [#allocation6 + $0x1], 1 }
 0x479   :  { %2007 = vsyncpa [#allocation9], 1 }
 0x47a   :  { %2008 = vsyncpa [#allocation12], 1 }
 0x47b   :  { %2009 = vsyncpa [#allocation15], 1 }
 0x47c   :  { %2010 = vsyncpa [#allocation4], 1 }
 0x47d   :  { %2012 = vsyncpa [#allocation4 + $0x1], 1 }

</bundles_post_ra>
